<compile_context>
chip_gen: v6e
topology: v6e:2x2x1
jax: 0.10.0
libtpu: 0.0.40
codegen_flags: <defaults>
</compile_context>

<pallas_src>
import jax
import jax.numpy as jnp
from jax.experimental import pallas as pl
from jax.experimental.pallas import tpu as pltpu

# ---------------- config (small, consistent with the module) ----------------
VOCAB = 16          # len(token_list)
PAD = 0             # token2idx['PAD']
D_INPUT = 8         # args.d_input
MAX_VAR = 3         # args.max_var  -> (max_var+1)*3*d_input = 96 flattened features
D_MODEL = 64        # args.d_model  -> nhead = 64 // 64 = 1
N_HEAD = D_MODEL // 64
D_FF = 4 * D_MODEL
D_OUTPUT = 32       # args.d_output
N_LAYERS = 2        # args.n_TE_layers
B = 2               # batch
SEQ = 8             # N_max (number of sample points)
LN_EPS = 1e-5
FLAT_IN = (MAX_VAR + 1) * 3 * D_INPUT   # 96


# ------------------------- fully fused Pallas kernel -------------------------
def _mdlformer_fused_kernel(flat_ref, attn_bias_ref, pool_bias_ref,
                            lin_w1_ref, lin_b1_ref, lin_w2_ref, lin_b2_ref,
                            wqkv_ref, bqkv_ref, wo_ref, bo_ref,
                            g1_ref, be1_ref, w1_ref, b1_ref, w2_ref, b2_ref,
                            g2_ref, be2_ref,
                            pool_w_ref, pool_b_ref, bn_w_ref, bn_b_ref,
                            ow1_ref, ob1_ref, ow2_ref, ob2_ref,
                            out_ref, bn_out_ref):
    x = flat_ref[...]                       # (B*S, FLAT_IN)
    attn_bias = attn_bias_ref[...]          # (B*S, B*S)  0 / -1e9
    pool_bias = pool_bias_ref[...]          # (B,   B*S)  0 / -1e9

    # ---- input MLP: Linear -> ReLU -> Linear -> ReLU ----
    x = jnp.maximum(
        jnp.dot(x, lin_w1_ref[...], preferred_element_type=jnp.float32) + lin_b1_ref[...],
        0.0)
    x = jnp.maximum(
        jnp.dot(x, lin_w2_ref[...], preferred_element_type=jnp.float32) + lin_b2_ref[...],
        0.0)                                # (B*S, d_model)

    def layer_norm(v, g, b):
        mu = jnp.mean(v, axis=-1, keepdims=True)
        var = jnp.mean(v * v, axis=-1, keepdims=True) - mu * mu
        return (v - mu) * jax.lax.rsqrt(var + LN_EPS) * g + b

    def masked_softmax(s):
        m = jnp.max(s, axis=-1, keepdims=True)
        p = jnp.exp(s - m)
        return p * pl.reciprocal(jnp.sum(p, axis=-1, keepdims=True), approx=True)

    # ---- transformer encoder layers (post-norm), unrolled over stacked weights ----
    # n_head == 1 at d_model=64. Attention is computed over all B*S rows at once;
    # the block-diagonal + key-padding bias keeps batches independent.
    # TODO(synk): if n_head > 1, switch to a batched dot_general over a head axis.
    for l in range(N_LAYERS):
        qkv = jnp.dot(x, wqkv_ref[l], preferred_element_type=jnp.float32) + bqkv_ref[l]
        q = qkv[:, 0:D_MODEL]               # 1/sqrt(d_head) already folded into Q weights
        k = qkv[:, D_MODEL:2 * D_MODEL]
        v = qkv[:, 2 * D_MODEL:3 * D_MODEL]

        # scores: contract last dims directly (no k.T copy)
        s = jax.lax.dot_general(q, k, (((1,), (1,)), ((), ())),
                                preferred_element_type=jnp.float32)   # (B*S, B*S)
        p = masked_softmax(s + attn_bias)
        attn = jnp.dot(p, v, preferred_element_type=jnp.float32)      # (B*S, d)
        attn = jnp.dot(attn, wo_ref[l], preferred_element_type=jnp.float32) + bo_ref[l]

        x = layer_norm(x + attn, g1_ref[l], be1_ref[l])

        f = jnp.maximum(
            jnp.dot(x, w1_ref[l], preferred_element_type=jnp.float32) + b1_ref[l], 0.0)
        f = jnp.dot(f, w2_ref[l], preferred_element_type=jnp.float32) + b2_ref[l]
        x = layer_norm(x + f, g2_ref[l], be2_ref[l])

    # ---- attention pooling: masked softmax per batch segment, fully dense ----
    score = jax.lax.dot_general(pool_w_ref[...], x, (((1,), (1,)), ((), ())),
                                preferred_element_type=jnp.float32) + pool_b_ref[...]  # (1, B*S)
    p = masked_softmax(score + pool_bias)                              # (B, B*S)
    pooled = jnp.dot(p, x, preferred_element_type=jnp.float32)         # (B, d)

    # ---- bottleneck ----
    bn = jnp.dot(pooled, bn_w_ref[...], preferred_element_type=jnp.float32) + bn_b_ref[...]
    bn_out_ref[...] = bn                                               # (B, D_OUTPUT)

    # ---- output MLP (out_act = Identity); final width-1 proj as VPU lane-reduce ----
    o = jnp.maximum(
        jnp.dot(bn, ow1_ref[...], preferred_element_type=jnp.float32) + ob1_ref[...], 0.0)
    out_ref[...] = jnp.sum(o * ow2_ref[...], axis=-1, keepdims=True) + ob2_ref[...]   # (B, 1)


def _full_spec(arr):
    nd = arr.ndim
    return pl.BlockSpec(arr.shape, lambda i, _nd=nd: (0,) * _nd)


def mdlformer_fused(flat, attn_bias, pool_bias, fp):
    """Single pallas_call for the whole post-embedding forward."""
    Bsz = pool_bias.shape[0]
    args = (flat, attn_bias, pool_bias,
            fp["lin_w1"], fp["lin_b1"], fp["lin_w2"], fp["lin_b2"],
            fp["wqkv"], fp["bqkv"], fp["wo"], fp["bo"],
            fp["g1"], fp["be1"], fp["w1"], fp["b1"], fp["w2"], fp["b2"],
            fp["g2"], fp["be2"],
            fp["pool_w"], fp["pool_b"], fp["bn_w"], fp["bn_b"],
            fp["out_w1"], fp["out_b1"], fp["out_w2"], fp["out_b2"])
    out_shapes = (jax.ShapeDtypeStruct((Bsz, 1), jnp.float32),
                  jax.ShapeDtypeStruct((Bsz, D_OUTPUT), jnp.float32))
    out, bn = pl.pallas_call(
        _mdlformer_fused_kernel,
        out_shape=out_shapes,
        grid=(1,),                      # whole model in one grid step on one TensorCore
        in_specs=[_full_spec(a) for a in args],
        out_specs=(pl.BlockSpec((Bsz, 1), lambda i: (0, 0)),
                   pl.BlockSpec((Bsz, D_OUTPUT), lambda i: (0, 0))),
        compiler_params=pltpu.CompilerParams(dimension_semantics=("arbitrary",)),
    )(*args)
    return out, bn


# --------------------------- parameter setup --------------------------------
def init_params(key):
    p = {}
    ks = iter(jax.random.split(key, 64))

    def w(shape, scale=0.05):
        return (scale * jax.random.normal(next(ks), shape)).astype(jnp.float32)

    # embedding (padding_idx row zeroed, like nn.Embedding(padding_idx=PAD))
    emb = w((VOCAB, D_INPUT), 0.1)
    p["embedding"] = emb.at[PAD].set(0.0)

    # self.linear = MLP(FLAT_IN, FLAT_IN, D_MODEL)
    p["lin_w1"], p["lin_b1"] = w((FLAT_IN, FLAT_IN)), jnp.zeros((FLAT_IN,), jnp.float32)
    p["lin_w2"], p["lin_b2"] = w((FLAT_IN, D_MODEL)), jnp.zeros((D_MODEL,), jnp.float32)

    # transformer encoder layers
    layers = []
    for _ in range(N_LAYERS):
        layers.append((
            w((D_MODEL, 3 * D_MODEL)), jnp.zeros((3 * D_MODEL,), jnp.float32),      # in_proj
            w((D_MODEL, D_MODEL)), jnp.zeros((D_MODEL,), jnp.float32),              # out_proj
            jnp.ones((D_MODEL,), jnp.float32), jnp.zeros((D_MODEL,), jnp.float32),  # ln1
            w((D_MODEL, D_FF)), jnp.zeros((D_FF,), jnp.float32),                    # ffn linear1
            w((D_FF, D_MODEL)), jnp.zeros((D_MODEL,), jnp.float32),                 # ffn linear2
            jnp.ones((D_MODEL,), jnp.float32), jnp.zeros((D_MODEL,), jnp.float32),  # ln2
        ))
    p["layers"] = layers

    # attention pooling scorer
    p["pool_w"], p["pool_b"] = w((D_MODEL, 1)), jnp.zeros((1,), jnp.float32)

    # bottleneck
    p["bn_w"], p["bn_b"] = w((D_MODEL, D_OUTPUT)), jnp.zeros((D_OUTPUT,), jnp.float32)

    # self.output = MLP(D_OUTPUT, D_OUTPUT, 1, out_act=Identity)
    p["out_w1"], p["out_b1"] = w((D_OUTPUT, D_OUTPUT)), jnp.zeros((D_OUTPUT,), jnp.float32)
    p["out_w2"], p["out_b2"] = w((D_OUTPUT, 1)), jnp.zeros((1,), jnp.float32)
    return p


def prepare_fused_params(p):
    """Stack per-layer weights on a leading (N_LAYERS,) axis, reshape biases to rows,
    and fold the 1/sqrt(d_head) attention scale into the Q projection."""
    dh = D_MODEL // N_HEAD
    scale = jnp.float32(1.0 / (dh ** 0.5))
    keys = ("wqkv", "bqkv", "wo", "bo", "g1", "be1", "w1", "b1", "w2", "b2", "g2", "be2")
    stk = {k: [] for k in keys}
    for (wqkv, bqkv, wo, bo, g1, be1, w1, b1, w2, b2, g2, be2) in p["layers"]:
        wqkv = wqkv.at[:, :D_MODEL].multiply(scale)     # fold scale into Q weights
        bqkv = bqkv.at[:D_MODEL].multiply(scale)        # ... and Q bias
        stk["wqkv"].append(wqkv); stk["bqkv"].append(bqkv.reshape(1, -1))
        stk["wo"].append(wo);     stk["bo"].append(bo.reshape(1, -1))
        stk["g1"].append(g1.reshape(1, -1)); stk["be1"].append(be1.reshape(1, -1))
        stk["w1"].append(w1);     stk["b1"].append(b1.reshape(1, -1))
        stk["w2"].append(w2);     stk["b2"].append(b2.reshape(1, -1))
        stk["g2"].append(g2.reshape(1, -1)); stk["be2"].append(be2.reshape(1, -1))
    fp = {k: jnp.stack(v, axis=0) for k, v in stk.items()}
    fp.update(
        lin_w1=p["lin_w1"], lin_b1=p["lin_b1"].reshape(1, -1),
        lin_w2=p["lin_w2"], lin_b2=p["lin_b2"].reshape(1, -1),
        pool_w=p["pool_w"].reshape(1, D_MODEL), pool_b=p["pool_b"].reshape(1, 1),
        bn_w=p["bn_w"], bn_b=p["bn_b"].reshape(1, -1),
        out_w1=p["out_w1"], out_b1=p["out_b1"].reshape(1, -1),
        out_w2=p["out_w2"].reshape(1, D_OUTPUT), out_b2=p["out_b2"].reshape(1, 1),
    )
    return fp


# ------------------------------ forward pass --------------------------------
def mdlformer_forward(tokens, p, fused_params=None):
    """tokens: (B, N, MAX_VAR+1, 3) int32 of token indices."""
    fp = prepare_fused_params(p) if fused_params is None else fused_params
    Bsz, S = tokens.shape[0], tokens.shape[1]
    BS = Bsz * S

    # src_key_padding_mask = (tokens[..., -1, 0] == PAD)
    pad_bool = tokens[:, :, -1, 0] == PAD                 # (B, S)
    key_ok = jnp.logical_not(pad_bool).reshape(BS)        # (B*S,)
    batch_id = jnp.repeat(jnp.arange(Bsz), S)             # (B*S,)

    # attention bias: 0 where (same batch & key not padded), else -1e9
    attn_ok = (batch_id[:, None] == batch_id[None, :]) & key_ok[None, :]
    attn_bias = jnp.where(attn_ok, 0.0, -1e9).astype(jnp.float32)      # (B*S, B*S)
    # pooling bias: 0 where (token belongs to batch b & not padded), else -1e9
    pool_ok = (jnp.arange(Bsz)[:, None] == batch_id[None, :]) & key_ok[None, :]
    pool_bias = jnp.where(pool_ok, 0.0, -1e9).astype(jnp.float32)      # (B, B*S)

    # TODO(synk): embedding gather stays in plain JAX (jnp.take); no clean
    #             rectangular-tile Pallas path for a 16-row table at this scale.
    emb = jnp.take(p["embedding"], tokens, axis=0)        # (B, S, V+1, 3, D_INPUT)
    flat = emb.reshape(BS, FLAT_IN).astype(jnp.float32)   # flatten(-3, -1)

    out, bottleneck = mdlformer_fused(flat, attn_bias, pool_bias, fp)
    return out[:, 0], bottleneck


# --------------------------- pure-JAX reference ------------------------------
def reference_forward(tokens, p):
    Bsz, S = tokens.shape[0], tokens.shape[1]
    pad_mask = (tokens[:, :, -1, 0] == PAD).astype(jnp.float32)

    emb = jnp.take(p["embedding"], tokens, axis=0)
    x = emb.reshape(Bsz, S, FLAT_IN)
    x = jnp.maximum(x @ p["lin_w1"] + p["lin_b1"], 0.0)
    x = jnp.maximum(x @ p["lin_w2"] + p["lin_b2"], 0.0)

    def layer_norm(v, g, b):
        mu = jnp.mean(v, axis=-1, keepdims=True)
        var = jnp.mean((v - mu) ** 2, axis=-1, keepdims=True)
        return (v - mu) * jax.lax.rsqrt(var + LN_EPS) * g + b

    neg = pad_mask[:, None, :] * (-1e9)            # (B, 1, S)
    dh = D_MODEL // N_HEAD
    for (wqkv, bqkv, wo, bo, g1, be1, w1, b1, w2, b2, g2, be2) in p["layers"]:
        qkv = x @ wqkv + bqkv
        q, k, v = qkv[..., :D_MODEL], qkv[..., D_MODEL:2 * D_MODEL], qkv[..., 2 * D_MODEL:]
        outs = []
        for h in range(N_HEAD):
            qh = q[..., h * dh:(h + 1) * dh] / (dh ** 0.5)
            kh = k[..., h * dh:(h + 1) * dh]
            vh = v[..., h * dh:(h + 1) * dh]
            s = jnp.einsum("bqd,bkd->bqk", qh, kh) + neg
            a = jax.nn.softmax(s, axis=-1)
            outs.append(jnp.einsum("bqk,bkd->bqd", a, vh))
        attn = jnp.concatenate(outs, axis=-1) @ wo + bo
        x = layer_norm(x + attn, g1, be1)
        f = jnp.maximum(x @ w1 + b1, 0.0) @ w2 + b2
        x = layer_norm(x + f, g2, be2)

    score = (x @ p["pool_w"])[..., 0] + p["pool_b"][0] + pad_mask * (-1e9)     # (B, S)
    a = jax.nn.softmax(score, axis=-1)
    pooled = jnp.einsum("bs,bsd->bd", a, x)
    bottleneck = pooled @ p["bn_w"] + p["bn_b"]
    o = jnp.maximum(bottleneck @ p["out_w1"] + p["out_b1"], 0.0)
    o = (o @ p["out_w2"] + p["out_b2"])[:, 0]
    return o, bottleneck


# ----------------------------------- main ------------------------------------
if __name__ == "__main__":
    key = jax.random.PRNGKey(0)
    kp, kd = jax.random.split(key)
    params = init_params(kp)
    fused_params = prepare_fused_params(params)   # one-time weight stacking / scale fold

    # synthetic token tensor (B, N, MAX_VAR+1, 3); last two seq positions of batch 0 are PAD
    tokens = jax.random.randint(kd, (B, SEQ, MAX_VAR + 1, 3), 1, VOCAB, dtype=jnp.int32)
    tokens = tokens.at[0, 6:, :, :].set(PAD)

    fwd = jax.jit(mdlformer_forward)
    out, bottleneck = fwd(tokens, params, fused_params)
    out = jax.block_until_ready(out)
    bottleneck = jax.block_until_ready(bottleneck)

    ref_out, ref_bn = reference_forward(tokens, params)
    assert out.shape == (B,) and bottleneck.shape == (B, D_OUTPUT)
    assert bool(jnp.all(jnp.isfinite(out))) and bool(jnp.all(jnp.isfinite(bottleneck)))
    assert jnp.allclose(out, ref_out, atol=5e-2, rtol=5e-2)
    assert jnp.allclose(bottleneck, ref_bn, atol=5e-2, rtol=5e-2)

    print("KERNEL_OK")
</pallas_src>

<mosaic_0001>
module attributes {stable_mosaic.version = 11 : i64} {
  func.func @_mdlformer_fused_kernel(%arg0: i32, %arg1: memref<16x96xf32, #tpu.memory_space<vmem>>, %arg2: memref<16x16xf32, #tpu.memory_space<vmem>>, %arg3: memref<2x16xf32, #tpu.memory_space<vmem>>, %arg4: memref<96x96xf32, #tpu.memory_space<vmem>>, %arg5: memref<1x96xf32, #tpu.memory_space<vmem>>, %arg6: memref<96x64xf32, #tpu.memory_space<vmem>>, %arg7: memref<1x64xf32, #tpu.memory_space<vmem>>, %arg8: memref<2x64x192xf32, #tpu.memory_space<vmem>>, %arg9: memref<2x1x192xf32, #tpu.memory_space<vmem>>, %arg10: memref<2x64x64xf32, #tpu.memory_space<vmem>>, %arg11: memref<2x1x64xf32, #tpu.memory_space<vmem>>, %arg12: memref<2x1x64xf32, #tpu.memory_space<vmem>>, %arg13: memref<2x1x64xf32, #tpu.memory_space<vmem>>, %arg14: memref<2x64x256xf32, #tpu.memory_space<vmem>>, %arg15: memref<2x1x256xf32, #tpu.memory_space<vmem>>, %arg16: memref<2x256x64xf32, #tpu.memory_space<vmem>>, %arg17: memref<2x1x64xf32, #tpu.memory_space<vmem>>, %arg18: memref<2x1x64xf32, #tpu.memory_space<vmem>>, %arg19: memref<2x1x64xf32, #tpu.memory_space<vmem>>, %arg20: memref<1x64xf32, #tpu.memory_space<vmem>>, %arg21: memref<1x1xf32, #tpu.memory_space<vmem>>, %arg22: memref<64x32xf32, #tpu.memory_space<vmem>>, %arg23: memref<1x32xf32, #tpu.memory_space<vmem>>, %arg24: memref<32x32xf32, #tpu.memory_space<vmem>>, %arg25: memref<1x32xf32, #tpu.memory_space<vmem>>, %arg26: memref<1x32xf32, #tpu.memory_space<vmem>>, %arg27: memref<1x1xf32, #tpu.memory_space<vmem>>, %arg28: memref<2x1xf32, #tpu.memory_space<vmem>>, %arg29: memref<2x32xf32, #tpu.memory_space<vmem>>) attributes {dimension_semantics = [#tpu.dimension_semantics<arbitrary>], iteration_bounds = array<i64: 1>, scalar_prefetch = 0 : i64, scratch_operands = 0 : i64, tpu.core_type = #tpu.core_type<tc>, window_params = [{pipeline_mode = #tpu.pipeline_mode<synchronous>, transform_indices = @transform_0, window_bounds = array<i64: 16, 96>}, {pipeline_mode = #tpu.pipeline_mode<synchronous>, transform_indices = @transform_1, window_bounds = array<i64: 16, 16>}, {pipeline_mode = #tpu.pipeline_mode<synchronous>, transform_indices = @transform_2, window_bounds = array<i64: 2, 16>}, {pipeline_mode = #tpu.pipeline_mode<synchronous>, transform_indices = @transform_3, window_bounds = array<i64: 96, 96>}, {pipeline_mode = #tpu.pipeline_mode<synchronous>, transform_indices = @transform_4, window_bounds = array<i64: 1, 96>}, {pipeline_mode = #tpu.pipeline_mode<synchronous>, transform_indices = @transform_5, window_bounds = array<i64: 96, 64>}, {pipeline_mode = #tpu.pipeline_mode<synchronous>, transform_indices = @transform_6, window_bounds = array<i64: 1, 64>}, {pipeline_mode = #tpu.pipeline_mode<synchronous>, transform_indices = @transform_7, window_bounds = array<i64: 2, 64, 192>}, {pipeline_mode = #tpu.pipeline_mode<synchronous>, transform_indices = @transform_8, window_bounds = array<i64: 2, 1, 192>}, {pipeline_mode = #tpu.pipeline_mode<synchronous>, transform_indices = @transform_9, window_bounds = array<i64: 2, 64, 64>}, {pipeline_mode = #tpu.pipeline_mode<synchronous>, transform_indices = @transform_10, window_bounds = array<i64: 2, 1, 64>}, {pipeline_mode = #tpu.pipeline_mode<synchronous>, transform_indices = @transform_11, window_bounds = array<i64: 2, 1, 64>}, {pipeline_mode = #tpu.pipeline_mode<synchronous>, transform_indices = @transform_12, window_bounds = array<i64: 2, 1, 64>}, {pipeline_mode = #tpu.pipeline_mode<synchronous>, transform_indices = @transform_13, window_bounds = array<i64: 2, 64, 256>}, {pipeline_mode = #tpu.pipeline_mode<synchronous>, transform_indices = @transform_14, window_bounds = array<i64: 2, 1, 256>}, {pipeline_mode = #tpu.pipeline_mode<synchronous>, transform_indices = @transform_15, window_bounds = array<i64: 2, 256, 64>}, {pipeline_mode = #tpu.pipeline_mode<synchronous>, transform_indices = @transform_16, window_bounds = array<i64: 2, 1, 64>}, {pipeline_mode = #tpu.pipeline_mode<synchronous>, transform_indices = @transform_17, window_bounds = array<i64: 2, 1, 64>}, {pipeline_mode = #tpu.pipeline_mode<synchronous>, transform_indices = @transform_18, window_bounds = array<i64: 2, 1, 64>}, {pipeline_mode = #tpu.pipeline_mode<synchronous>, transform_indices = @transform_19, window_bounds = array<i64: 1, 64>}, {pipeline_mode = #tpu.pipeline_mode<synchronous>, transform_indices = @transform_20, window_bounds = array<i64: 1, 1>}, {pipeline_mode = #tpu.pipeline_mode<synchronous>, transform_indices = @transform_21, window_bounds = array<i64: 64, 32>}, {pipeline_mode = #tpu.pipeline_mode<synchronous>, transform_indices = @transform_22, window_bounds = array<i64: 1, 32>}, {pipeline_mode = #tpu.pipeline_mode<synchronous>, transform_indices = @transform_23, window_bounds = array<i64: 32, 32>}, {pipeline_mode = #tpu.pipeline_mode<synchronous>, transform_indices = @transform_24, window_bounds = array<i64: 1, 32>}, {pipeline_mode = #tpu.pipeline_mode<synchronous>, transform_indices = @transform_25, window_bounds = array<i64: 1, 32>}, {pipeline_mode = #tpu.pipeline_mode<synchronous>, transform_indices = @transform_26, window_bounds = array<i64: 1, 1>}, {pipeline_mode = #tpu.pipeline_mode<synchronous>, transform_indices = @transform_27, window_bounds = array<i64: 2, 1>}, {pipeline_mode = #tpu.pipeline_mode<synchronous>, transform_indices = @transform_28, window_bounds = array<i64: 2, 32>}]} {
    %c0 = arith.constant 0 : index
    %c0_0 = arith.constant 0 : index
    %0 = vector.load %arg1[%c0, %c0_0] : memref<16x96xf32, #tpu.memory_space<vmem>>, vector<16x96xf32>
    %c0_1 = arith.constant 0 : index
    %c0_2 = arith.constant 0 : index
    %1 = vector.load %arg2[%c0_1, %c0_2] : memref<16x16xf32, #tpu.memory_space<vmem>>, vector<16x16xf32>
    %c0_3 = arith.constant 0 : index
    %c0_4 = arith.constant 0 : index
    %2 = vector.load %arg3[%c0_3, %c0_4] : memref<2x16xf32, #tpu.memory_space<vmem>>, vector<2x16xf32>
    %c0_5 = arith.constant 0 : index
    %c0_6 = arith.constant 0 : index
    %3 = vector.load %arg4[%c0_5, %c0_6] : memref<96x96xf32, #tpu.memory_space<vmem>>, vector<96x96xf32>
    %cst = arith.constant dense<0.000000e+00> : vector<16x96xf32>
    %4 = tpu.matmul %0, %3, %cst {dimension_numbers = #tpu.dot_dimension_numbers<[1], [0], [0], [1], [0, 0, 1, 1], [], []>} : vector<16x96xf32>, vector<96x96xf32>, vector<16x96xf32> -> vector<16x96xf32>
    %c0_7 = arith.constant 0 : index
    %c0_8 = arith.constant 0 : index
    %5 = vector.load %arg5[%c0_7, %c0_8] : memref<1x96xf32, #tpu.memory_space<vmem>>, vector<1x96xf32>
    %6 = vector.broadcast %5 : vector<1x96xf32> to vector<16x96xf32>
    %7 = arith.addf %4, %6 : vector<16x96xf32>
    %cst_9 = arith.constant 0.000000e+00 : f32
    %8 = vector.broadcast %cst_9 : f32 to vector<16x96xf32>
    %9 = arith.maximumf %7, %8 : vector<16x96xf32>
    %c0_10 = arith.constant 0 : index
    %c0_11 = arith.constant 0 : index
    %10 = vector.load %arg6[%c0_10, %c0_11] : memref<96x64xf32, #tpu.memory_space<vmem>>, vector<96x64xf32>
    %cst_12 = arith.constant dense<0.000000e+00> : vector<16x64xf32>
    %11 = tpu.matmul %9, %10, %cst_12 {dimension_numbers = #tpu.dot_dimension_numbers<[1], [0], [0], [1], [0, 0, 1, 1], [], []>} : vector<16x96xf32>, vector<96x64xf32>, vector<16x64xf32> -> vector<16x64xf32>
    %c0_13 = arith.constant 0 : index
    %c0_14 = arith.constant 0 : index
    %12 = vector.load %arg7[%c0_13, %c0_14] : memref<1x64xf32, #tpu.memory_space<vmem>>, vector<1x64xf32>
    %13 = vector.broadcast %12 : vector<1x64xf32> to vector<16x64xf32>
    %14 = arith.addf %11, %13 : vector<16x64xf32>
    %cst_15 = arith.constant 0.000000e+00 : f32
    %15 = vector.broadcast %cst_15 : f32 to vector<16x64xf32>
    %16 = arith.maximumf %14, %15 : vector<16x64xf32>
    %c0_16 = arith.constant 0 : index
    %c0_17 = arith.constant 0 : index
    %c0_18 = arith.constant 0 : index
    %17 = vector.load %arg8[%c0_16, %c0_17, %c0_18] : memref<2x64x192xf32, #tpu.memory_space<vmem>>, vector<1x64x192xf32>
    %18 = vector.shape_cast %17 : vector<1x64x192xf32> to vector<64x192xf32>
    %cst_19 = arith.constant dense<0.000000e+00> : vector<16x192xf32>
    %19 = tpu.matmul %16, %18, %cst_19 {dimension_numbers = #tpu.dot_dimension_numbers<[1], [0], [0], [1], [0, 0, 1, 1], [], []>} : vector<16x64xf32>, vector<64x192xf32>, vector<16x192xf32> -> vector<16x192xf32>
    %c0_20 = arith.constant 0 : index
    %c0_21 = arith.constant 0 : index
    %c0_22 = arith.constant 0 : index
    %20 = vector.load %arg9[%c0_20, %c0_21, %c0_22] : memref<2x1x192xf32, #tpu.memory_space<vmem>>, vector<1x1x192xf32>
    %21 = vector.shape_cast %20 : vector<1x1x192xf32> to vector<1x192xf32>
    %22 = vector.broadcast %21 : vector<1x192xf32> to vector<16x192xf32>
    %23 = arith.addf %19, %22 : vector<16x192xf32>
    %24 = vector.extract_strided_slice %23 {offsets = [0, 0], sizes = [16, 64], strides = [1, 1]} : vector<16x192xf32> to vector<16x64xf32>
    %25 = vector.extract_strided_slice %23 {offsets = [0, 64], sizes = [16, 64], strides = [1, 1]} : vector<16x192xf32> to vector<16x64xf32>
    %26 = vector.extract_strided_slice %23 {offsets = [0, 128], sizes = [16, 64], strides = [1, 1]} : vector<16x192xf32> to vector<16x64xf32>
    %cst_23 = arith.constant dense<0.000000e+00> : vector<16x16xf32>
    %27 = tpu.matmul %24, %25, %cst_23 {dimension_numbers = #tpu.dot_dimension_numbers<[1], [1], [0], [0], [0, 0, 1, 0], [], []>} : vector<16x64xf32>, vector<16x64xf32>, vector<16x16xf32> -> vector<16x16xf32>
    %28 = arith.addf %27, %1 : vector<16x16xf32>
    %cst_24 = arith.constant dense<0xFF800000> : vector<16xf32>
    %29 = vector.multi_reduction <maximumf>, %28, %cst_24 [1] : vector<16x16xf32> to vector<16xf32>
    %30 = vector.shape_cast %29 : vector<16xf32> to vector<16x1xf32>
    %31 = vector.broadcast %30 : vector<16x1xf32> to vector<16x16xf32>
    %32 = arith.subf %28, %31 : vector<16x16xf32>
    %33 = math.exp %32 : vector<16x16xf32>
    %cst_25 = arith.constant dense<0.000000e+00> : vector<16xf32>
    %34 = vector.multi_reduction <add>, %33, %cst_25 [1] : vector<16x16xf32> to vector<16xf32>
    %35 = vector.shape_cast %34 : vector<16xf32> to vector<16x1xf32>
    %36 = tpu.reciprocal %35 {approx = true} : vector<16x1xf32> -> vector<16x1xf32>
    %37 = vector.broadcast %36 : vector<16x1xf32> to vector<16x16xf32>
    %38 = arith.mulf %33, %37 : vector<16x16xf32>
    %cst_26 = arith.constant dense<0.000000e+00> : vector<16x64xf32>
    %39 = tpu.matmul %38, %26, %cst_26 {dimension_numbers = #tpu.dot_dimension_numbers<[1], [0], [0], [1], [0, 0, 1, 1], [], []>} : vector<16x16xf32>, vector<16x64xf32>, vector<16x64xf32> -> vector<16x64xf32>
    %c0_27 = arith.constant 0 : index
    %c0_28 = arith.constant 0 : index
    %c0_29 = arith.constant 0 : index
    %40 = vector.load %arg10[%c0_27, %c0_28, %c0_29] : memref<2x64x64xf32, #tpu.memory_space<vmem>>, vector<1x64x64xf32>
    %41 = vector.shape_cast %40 : vector<1x64x64xf32> to vector<64x64xf32>
    %cst_30 = arith.constant dense<0.000000e+00> : vector<16x64xf32>
    %42 = tpu.matmul %39, %41, %cst_30 {dimension_numbers = #tpu.dot_dimension_numbers<[1], [0], [0], [1], [0, 0, 1, 1], [], []>} : vector<16x64xf32>, vector<64x64xf32>, vector<16x64xf32> -> vector<16x64xf32>
    %c0_31 = arith.constant 0 : index
    %c0_32 = arith.constant 0 : index
    %c0_33 = arith.constant 0 : index
    %43 = vector.load %arg11[%c0_31, %c0_32, %c0_33] : memref<2x1x64xf32, #tpu.memory_space<vmem>>, vector<1x1x64xf32>
    %44 = vector.shape_cast %43 : vector<1x1x64xf32> to vector<1x64xf32>
    %45 = vector.broadcast %44 : vector<1x64xf32> to vector<16x64xf32>
    %46 = arith.addf %42, %45 : vector<16x64xf32>
    %47 = arith.addf %16, %46 : vector<16x64xf32>
    %c0_34 = arith.constant 0 : index
    %c0_35 = arith.constant 0 : index
    %c0_36 = arith.constant 0 : index
    %48 = vector.load %arg12[%c0_34, %c0_35, %c0_36] : memref<2x1x64xf32, #tpu.memory_space<vmem>>, vector<1x1x64xf32>
    %49 = vector.shape_cast %48 : vector<1x1x64xf32> to vector<1x64xf32>
    %c0_37 = arith.constant 0 : index
    %c0_38 = arith.constant 0 : index
    %c0_39 = arith.constant 0 : index
    %50 = vector.load %arg13[%c0_37, %c0_38, %c0_39] : memref<2x1x64xf32, #tpu.memory_space<vmem>>, vector<1x1x64xf32>
    %51 = vector.shape_cast %50 : vector<1x1x64xf32> to vector<1x64xf32>
    %cst_40 = arith.constant dense<0.000000e+00> : vector<16xf32>
    %52 = vector.multi_reduction <add>, %47, %cst_40 [1] : vector<16x64xf32> to vector<16xf32>
    %53 = vector.shape_cast %52 : vector<16xf32> to vector<16x1xf32>
    %cst_41 = arith.constant 6.400000e+01 : f32
    %54 = vector.broadcast %cst_41 : f32 to vector<16x1xf32>
    %55 = arith.divf %53, %54 : vector<16x1xf32>
    %56 = arith.mulf %47, %47 : vector<16x64xf32>
    %cst_42 = arith.constant dense<0.000000e+00> : vector<16xf32>
    %57 = vector.multi_reduction <add>, %56, %cst_42 [1] : vector<16x64xf32> to vector<16xf32>
    %58 = vector.shape_cast %57 : vector<16xf32> to vector<16x1xf32>
    %cst_43 = arith.constant 6.400000e+01 : f32
    %59 = vector.broadcast %cst_43 : f32 to vector<16x1xf32>
    %60 = arith.divf %58, %59 : vector<16x1xf32>
    %61 = arith.mulf %55, %55 : vector<16x1xf32>
    %62 = arith.subf %60, %61 : vector<16x1xf32>
    %63 = vector.broadcast %55 : vector<16x1xf32> to vector<16x64xf32>
    %64 = arith.subf %47, %63 : vector<16x64xf32>
    %cst_44 = arith.constant 9.99999974E-6 : f32
    %65 = vector.broadcast %cst_44 : f32 to vector<16x1xf32>
    %66 = arith.addf %62, %65 : vector<16x1xf32>
    %67 = math.rsqrt %66 : vector<16x1xf32>
    %68 = vector.broadcast %67 : vector<16x1xf32> to vector<16x64xf32>
    %69 = arith.mulf %64, %68 : vector<16x64xf32>
    %70 = vector.broadcast %49 : vector<1x64xf32> to vector<16x64xf32>
    %71 = arith.mulf %69, %70 : vector<16x64xf32>
    %72 = vector.broadcast %51 : vector<1x64xf32> to vector<16x64xf32>
    %73 = arith.addf %71, %72 : vector<16x64xf32>
    %c0_45 = arith.constant 0 : index
    %c0_46 = arith.constant 0 : index
    %c0_47 = arith.constant 0 : index
    %74 = vector.load %arg14[%c0_45, %c0_46, %c0_47] : memref<2x64x256xf32, #tpu.memory_space<vmem>>, vector<1x64x256xf32>
    %75 = vector.shape_cast %74 : vector<1x64x256xf32> to vector<64x256xf32>
    %cst_48 = arith.constant dense<0.000000e+00> : vector<16x256xf32>
    %76 = tpu.matmul %73, %75, %cst_48 {dimension_numbers = #tpu.dot_dimension_numbers<[1], [0], [0], [1], [0, 0, 1, 1], [], []>} : vector<16x64xf32>, vector<64x256xf32>, vector<16x256xf32> -> vector<16x256xf32>
    %c0_49 = arith.constant 0 : index
    %c0_50 = arith.constant 0 : index
    %c0_51 = arith.constant 0 : index
    %77 = vector.load %arg15[%c0_49, %c0_50, %c0_51] : memref<2x1x256xf32, #tpu.memory_space<vmem>>, vector<1x1x256xf32>
    %78 = vector.shape_cast %77 : vector<1x1x256xf32> to vector<1x256xf32>
    %79 = vector.broadcast %78 : vector<1x256xf32> to vector<16x256xf32>
    %80 = arith.addf %76, %79 : vector<16x256xf32>
    %cst_52 = arith.constant 0.000000e+00 : f32
    %81 = vector.broadcast %cst_52 : f32 to vector<16x256xf32>
    %82 = arith.maximumf %80, %81 : vector<16x256xf32>
    %c0_53 = arith.constant 0 : index
    %c0_54 = arith.constant 0 : index
    %c0_55 = arith.constant 0 : index
    %83 = vector.load %arg16[%c0_53, %c0_54, %c0_55] : memref<2x256x64xf32, #tpu.memory_space<vmem>>, vector<1x256x64xf32>
    %84 = vector.shape_cast %83 : vector<1x256x64xf32> to vector<256x64xf32>
    %cst_56 = arith.constant dense<0.000000e+00> : vector<16x64xf32>
    %85 = tpu.matmul %82, %84, %cst_56 {dimension_numbers = #tpu.dot_dimension_numbers<[1], [0], [0], [1], [0, 0, 1, 1], [], []>} : vector<16x256xf32>, vector<256x64xf32>, vector<16x64xf32> -> vector<16x64xf32>
    %c0_57 = arith.constant 0 : index
    %c0_58 = arith.constant 0 : index
    %c0_59 = arith.constant 0 : index
    %86 = vector.load %arg17[%c0_57, %c0_58, %c0_59] : memref<2x1x64xf32, #tpu.memory_space<vmem>>, vector<1x1x64xf32>
    %87 = vector.shape_cast %86 : vector<1x1x64xf32> to vector<1x64xf32>
    %88 = vector.broadcast %87 : vector<1x64xf32> to vector<16x64xf32>
    %89 = arith.addf %85, %88 : vector<16x64xf32>
    %90 = arith.addf %73, %89 : vector<16x64xf32>
    %c0_60 = arith.constant 0 : index
    %c0_61 = arith.constant 0 : index
    %c0_62 = arith.constant 0 : index
    %91 = vector.load %arg18[%c0_60, %c0_61, %c0_62] : memref<2x1x64xf32, #tpu.memory_space<vmem>>, vector<1x1x64xf32>
    %92 = vector.shape_cast %91 : vector<1x1x64xf32> to vector<1x64xf32>
    %c0_63 = arith.constant 0 : index
    %c0_64 = arith.constant 0 : index
    %c0_65 = arith.constant 0 : index
    %93 = vector.load %arg19[%c0_63, %c0_64, %c0_65] : memref<2x1x64xf32, #tpu.memory_space<vmem>>, vector<1x1x64xf32>
    %94 = vector.shape_cast %93 : vector<1x1x64xf32> to vector<1x64xf32>
    %cst_66 = arith.constant dense<0.000000e+00> : vector<16xf32>
    %95 = vector.multi_reduction <add>, %90, %cst_66 [1] : vector<16x64xf32> to vector<16xf32>
    %96 = vector.shape_cast %95 : vector<16xf32> to vector<16x1xf32>
    %cst_67 = arith.constant 6.400000e+01 : f32
    %97 = vector.broadcast %cst_67 : f32 to vector<16x1xf32>
    %98 = arith.divf %96, %97 : vector<16x1xf32>
    %99 = arith.mulf %90, %90 : vector<16x64xf32>
    %cst_68 = arith.constant dense<0.000000e+00> : vector<16xf32>
    %100 = vector.multi_reduction <add>, %99, %cst_68 [1] : vector<16x64xf32> to vector<16xf32>
    %101 = vector.shape_cast %100 : vector<16xf32> to vector<16x1xf32>
    %cst_69 = arith.constant 6.400000e+01 : f32
    %102 = vector.broadcast %cst_69 : f32 to vector<16x1xf32>
    %103 = arith.divf %101, %102 : vector<16x1xf32>
    %104 = arith.mulf %98, %98 : vector<16x1xf32>
    %105 = arith.subf %103, %104 : vector<16x1xf32>
    %106 = vector.broadcast %98 : vector<16x1xf32> to vector<16x64xf32>
    %107 = arith.subf %90, %106 : vector<16x64xf32>
    %cst_70 = arith.constant 9.99999974E-6 : f32
    %108 = vector.broadcast %cst_70 : f32 to vector<16x1xf32>
    %109 = arith.addf %105, %108 : vector<16x1xf32>
    %110 = math.rsqrt %109 : vector<16x1xf32>
    %111 = vector.broadcast %110 : vector<16x1xf32> to vector<16x64xf32>
    %112 = arith.mulf %107, %111 : vector<16x64xf32>
    %113 = vector.broadcast %92 : vector<1x64xf32> to vector<16x64xf32>
    %114 = arith.mulf %112, %113 : vector<16x64xf32>
    %115 = vector.broadcast %94 : vector<1x64xf32> to vector<16x64xf32>
    %116 = arith.addf %114, %115 : vector<16x64xf32>
    %c1 = arith.constant 1 : index
    %c0_71 = arith.constant 0 : index
    %c0_72 = arith.constant 0 : index
    %117 = vector.load %arg8[%c1, %c0_71, %c0_72] : memref<2x64x192xf32, #tpu.memory_space<vmem>>, vector<1x64x192xf32>
    %118 = vector.shape_cast %117 : vector<1x64x192xf32> to vector<64x192xf32>
    %cst_73 = arith.constant dense<0.000000e+00> : vector<16x192xf32>
    %119 = tpu.matmul %116, %118, %cst_73 {dimension_numbers = #tpu.dot_dimension_numbers<[1], [0], [0], [1], [0, 0, 1, 1], [], []>} : vector<16x64xf32>, vector<64x192xf32>, vector<16x192xf32> -> vector<16x192xf32>
    %c1_74 = arith.constant 1 : index
    %c0_75 = arith.constant 0 : index
    %c0_76 = arith.constant 0 : index
    %120 = vector.load %arg9[%c1_74, %c0_75, %c0_76] : memref<2x1x192xf32, #tpu.memory_space<vmem>>, vector<1x1x192xf32>
    %121 = vector.shape_cast %120 : vector<1x1x192xf32> to vector<1x192xf32>
    %122 = vector.broadcast %121 : vector<1x192xf32> to vector<16x192xf32>
    %123 = arith.addf %119, %122 : vector<16x192xf32>
    %124 = vector.extract_strided_slice %123 {offsets = [0, 0], sizes = [16, 64], strides = [1, 1]} : vector<16x192xf32> to vector<16x64xf32>
    %125 = vector.extract_strided_slice %123 {offsets = [0, 64], sizes = [16, 64], strides = [1, 1]} : vector<16x192xf32> to vector<16x64xf32>
    %126 = vector.extract_strided_slice %123 {offsets = [0, 128], sizes = [16, 64], strides = [1, 1]} : vector<16x192xf32> to vector<16x64xf32>
    %cst_77 = arith.constant dense<0.000000e+00> : vector<16x16xf32>
    %127 = tpu.matmul %124, %125, %cst_77 {dimension_numbers = #tpu.dot_dimension_numbers<[1], [1], [0], [0], [0, 0, 1, 0], [], []>} : vector<16x64xf32>, vector<16x64xf32>, vector<16x16xf32> -> vector<16x16xf32>
    %128 = arith.addf %127, %1 : vector<16x16xf32>
    %cst_78 = arith.constant dense<0xFF800000> : vector<16xf32>
    %129 = vector.multi_reduction <maximumf>, %128, %cst_78 [1] : vector<16x16xf32> to vector<16xf32>
    %130 = vector.shape_cast %129 : vector<16xf32> to vector<16x1xf32>
    %131 = vector.broadcast %130 : vector<16x1xf32> to vector<16x16xf32>
    %132 = arith.subf %128, %131 : vector<16x16xf32>
    %133 = math.exp %132 : vector<16x16xf32>
    %cst_79 = arith.constant dense<0.000000e+00> : vector<16xf32>
    %134 = vector.multi_reduction <add>, %133, %cst_79 [1] : vector<16x16xf32> to vector<16xf32>
    %135 = vector.shape_cast %134 : vector<16xf32> to vector<16x1xf32>
    %136 = tpu.reciprocal %135 {approx = true} : vector<16x1xf32> -> vector<16x1xf32>
    %137 = vector.broadcast %136 : vector<16x1xf32> to vector<16x16xf32>
    %138 = arith.mulf %133, %137 : vector<16x16xf32>
    %cst_80 = arith.constant dense<0.000000e+00> : vector<16x64xf32>
    %139 = tpu.matmul %138, %126, %cst_80 {dimension_numbers = #tpu.dot_dimension_numbers<[1], [0], [0], [1], [0, 0, 1, 1], [], []>} : vector<16x16xf32>, vector<16x64xf32>, vector<16x64xf32> -> vector<16x64xf32>
    %c1_81 = arith.constant 1 : index
    %c0_82 = arith.constant 0 : index
    %c0_83 = arith.constant 0 : index
    %140 = vector.load %arg10[%c1_81, %c0_82, %c0_83] : memref<2x64x64xf32, #tpu.memory_space<vmem>>, vector<1x64x64xf32>
    %141 = vector.shape_cast %140 : vector<1x64x64xf32> to vector<64x64xf32>
    %cst_84 = arith.constant dense<0.000000e+00> : vector<16x64xf32>
    %142 = tpu.matmul %139, %141, %cst_84 {dimension_numbers = #tpu.dot_dimension_numbers<[1], [0], [0], [1], [0, 0, 1, 1], [], []>} : vector<16x64xf32>, vector<64x64xf32>, vector<16x64xf32> -> vector<16x64xf32>
    %c1_85 = arith.constant 1 : index
    %c0_86 = arith.constant 0 : index
    %c0_87 = arith.constant 0 : index
    %143 = vector.load %arg11[%c1_85, %c0_86, %c0_87] : memref<2x1x64xf32, #tpu.memory_space<vmem>>, vector<1x1x64xf32>
    %144 = vector.shape_cast %143 : vector<1x1x64xf32> to vector<1x64xf32>
    %145 = vector.broadcast %144 : vector<1x64xf32> to vector<16x64xf32>
    %146 = arith.addf %142, %145 : vector<16x64xf32>
    %147 = arith.addf %116, %146 : vector<16x64xf32>
    %c1_88 = arith.constant 1 : index
    %c0_89 = arith.constant 0 : index
    %c0_90 = arith.constant 0 : index
    %148 = vector.load %arg12[%c1_88, %c0_89, %c0_90] : memref<2x1x64xf32, #tpu.memory_space<vmem>>, vector<1x1x64xf32>
    %149 = vector.shape_cast %148 : vector<1x1x64xf32> to vector<1x64xf32>
    %c1_91 = arith.constant 1 : index
    %c0_92 = arith.constant 0 : index
    %c0_93 = arith.constant 0 : index
    %150 = vector.load %arg13[%c1_91, %c0_92, %c0_93] : memref<2x1x64xf32, #tpu.memory_space<vmem>>, vector<1x1x64xf32>
    %151 = vector.shape_cast %150 : vector<1x1x64xf32> to vector<1x64xf32>
    %cst_94 = arith.constant dense<0.000000e+00> : vector<16xf32>
    %152 = vector.multi_reduction <add>, %147, %cst_94 [1] : vector<16x64xf32> to vector<16xf32>
    %153 = vector.shape_cast %152 : vector<16xf32> to vector<16x1xf32>
    %cst_95 = arith.constant 6.400000e+01 : f32
    %154 = vector.broadcast %cst_95 : f32 to vector<16x1xf32>
    %155 = arith.divf %153, %154 : vector<16x1xf32>
    %156 = arith.mulf %147, %147 : vector<16x64xf32>
    %cst_96 = arith.constant dense<0.000000e+00> : vector<16xf32>
    %157 = vector.multi_reduction <add>, %156, %cst_96 [1] : vector<16x64xf32> to vector<16xf32>
    %158 = vector.shape_cast %157 : vector<16xf32> to vector<16x1xf32>
    %cst_97 = arith.constant 6.400000e+01 : f32
    %159 = vector.broadcast %cst_97 : f32 to vector<16x1xf32>
    %160 = arith.divf %158, %159 : vector<16x1xf32>
    %161 = arith.mulf %155, %155 : vector<16x1xf32>
    %162 = arith.subf %160, %161 : vector<16x1xf32>
    %163 = vector.broadcast %155 : vector<16x1xf32> to vector<16x64xf32>
    %164 = arith.subf %147, %163 : vector<16x64xf32>
    %cst_98 = arith.constant 9.99999974E-6 : f32
    %165 = vector.broadcast %cst_98 : f32 to vector<16x1xf32>
    %166 = arith.addf %162, %165 : vector<16x1xf32>
    %167 = math.rsqrt %166 : vector<16x1xf32>
    %168 = vector.broadcast %167 : vector<16x1xf32> to vector<16x64xf32>
    %169 = arith.mulf %164, %168 : vector<16x64xf32>
    %170 = vector.broadcast %149 : vector<1x64xf32> to vector<16x64xf32>
    %171 = arith.mulf %169, %170 : vector<16x64xf32>
    %172 = vector.broadcast %151 : vector<1x64xf32> to vector<16x64xf32>
    %173 = arith.addf %171, %172 : vector<16x64xf32>
    %c1_99 = arith.constant 1 : index
    %c0_100 = arith.constant 0 : index
    %c0_101 = arith.constant 0 : index
    %174 = vector.load %arg14[%c1_99, %c0_100, %c0_101] : memref<2x64x256xf32, #tpu.memory_space<vmem>>, vector<1x64x256xf32>
    %175 = vector.shape_cast %174 : vector<1x64x256xf32> to vector<64x256xf32>
    %cst_102 = arith.constant dense<0.000000e+00> : vector<16x256xf32>
    %176 = tpu.matmul %173, %175, %cst_102 {dimension_numbers = #tpu.dot_dimension_numbers<[1], [0], [0], [1], [0, 0, 1, 1], [], []>} : vector<16x64xf32>, vector<64x256xf32>, vector<16x256xf32> -> vector<16x256xf32>
    %c1_103 = arith.constant 1 : index
    %c0_104 = arith.constant 0 : index
    %c0_105 = arith.constant 0 : index
    %177 = vector.load %arg15[%c1_103, %c0_104, %c0_105] : memref<2x1x256xf32, #tpu.memory_space<vmem>>, vector<1x1x256xf32>
    %178 = vector.shape_cast %177 : vector<1x1x256xf32> to vector<1x256xf32>
    %179 = vector.broadcast %178 : vector<1x256xf32> to vector<16x256xf32>
    %180 = arith.addf %176, %179 : vector<16x256xf32>
    %cst_106 = arith.constant 0.000000e+00 : f32
    %181 = vector.broadcast %cst_106 : f32 to vector<16x256xf32>
    %182 = arith.maximumf %180, %181 : vector<16x256xf32>
    %c1_107 = arith.constant 1 : index
    %c0_108 = arith.constant 0 : index
    %c0_109 = arith.constant 0 : index
    %183 = vector.load %arg16[%c1_107, %c0_108, %c0_109] : memref<2x256x64xf32, #tpu.memory_space<vmem>>, vector<1x256x64xf32>
    %184 = vector.shape_cast %183 : vector<1x256x64xf32> to vector<256x64xf32>
    %cst_110 = arith.constant dense<0.000000e+00> : vector<16x64xf32>
    %185 = tpu.matmul %182, %184, %cst_110 {dimension_numbers = #tpu.dot_dimension_numbers<[1], [0], [0], [1], [0, 0, 1, 1], [], []>} : vector<16x256xf32>, vector<256x64xf32>, vector<16x64xf32> -> vector<16x64xf32>
    %c1_111 = arith.constant 1 : index
    %c0_112 = arith.constant 0 : index
    %c0_113 = arith.constant 0 : index
    %186 = vector.load %arg17[%c1_111, %c0_112, %c0_113] : memref<2x1x64xf32, #tpu.memory_space<vmem>>, vector<1x1x64xf32>
    %187 = vector.shape_cast %186 : vector<1x1x64xf32> to vector<1x64xf32>
    %188 = vector.broadcast %187 : vector<1x64xf32> to vector<16x64xf32>
    %189 = arith.addf %185, %188 : vector<16x64xf32>
    %190 = arith.addf %173, %189 : vector<16x64xf32>
    %c1_114 = arith.constant 1 : index
    %c0_115 = arith.constant 0 : index
    %c0_116 = arith.constant 0 : index
    %191 = vector.load %arg18[%c1_114, %c0_115, %c0_116] : memref<2x1x64xf32, #tpu.memory_space<vmem>>, vector<1x1x64xf32>
    %192 = vector.shape_cast %191 : vector<1x1x64xf32> to vector<1x64xf32>
    %c1_117 = arith.constant 1 : index
    %c0_118 = arith.constant 0 : index
    %c0_119 = arith.constant 0 : index
    %193 = vector.load %arg19[%c1_117, %c0_118, %c0_119] : memref<2x1x64xf32, #tpu.memory_space<vmem>>, vector<1x1x64xf32>
    %194 = vector.shape_cast %193 : vector<1x1x64xf32> to vector<1x64xf32>
    %cst_120 = arith.constant dense<0.000000e+00> : vector<16xf32>
    %195 = vector.multi_reduction <add>, %190, %cst_120 [1] : vector<16x64xf32> to vector<16xf32>
    %196 = vector.shape_cast %195 : vector<16xf32> to vector<16x1xf32>
    %cst_121 = arith.constant 6.400000e+01 : f32
    %197 = vector.broadcast %cst_121 : f32 to vector<16x1xf32>
    %198 = arith.divf %196, %197 : vector<16x1xf32>
    %199 = arith.mulf %190, %190 : vector<16x64xf32>
    %cst_122 = arith.constant dense<0.000000e+00> : vector<16xf32>
    %200 = vector.multi_reduction <add>, %199, %cst_122 [1] : vector<16x64xf32> to vector<16xf32>
    %201 = vector.shape_cast %200 : vector<16xf32> to vector<16x1xf32>
    %cst_123 = arith.constant 6.400000e+01 : f32
    %202 = vector.broadcast %cst_123 : f32 to vector<16x1xf32>
    %203 = arith.divf %201, %202 : vector<16x1xf32>
    %204 = arith.mulf %198, %198 : vector<16x1xf32>
    %205 = arith.subf %203, %204 : vector<16x1xf32>
    %206 = vector.broadcast %198 : vector<16x1xf32> to vector<16x64xf32>
    %207 = arith.subf %190, %206 : vector<16x64xf32>
    %cst_124 = arith.constant 9.99999974E-6 : f32
    %208 = vector.broadcast %cst_124 : f32 to vector<16x1xf32>
    %209 = arith.addf %205, %208 : vector<16x1xf32>
    %210 = math.rsqrt %209 : vector<16x1xf32>
    %211 = vector.broadcast %210 : vector<16x1xf32> to vector<16x64xf32>
    %212 = arith.mulf %207, %211 : vector<16x64xf32>
    %213 = vector.broadcast %192 : vector<1x64xf32> to vector<16x64xf32>
    %214 = arith.mulf %212, %213 : vector<16x64xf32>
    %215 = vector.broadcast %194 : vector<1x64xf32> to vector<16x64xf32>
    %216 = arith.addf %214, %215 : vector<16x64xf32>
    %c0_125 = arith.constant 0 : index
    %c0_126 = arith.constant 0 : index
    %217 = vector.load %arg20[%c0_125, %c0_126] : memref<1x64xf32, #tpu.memory_space<vmem>>, vector<1x64xf32>
    %cst_127 = arith.constant dense<0.000000e+00> : vector<1x16xf32>
    %218 = tpu.matmul %217, %216, %cst_127 {dimension_numbers = #tpu.dot_dimension_numbers<[1], [1], [0], [0], [0, 0, 1, 0], [], []>} : vector<1x64xf32>, vector<16x64xf32>, vector<1x16xf32> -> vector<1x16xf32>
    %c0_128 = arith.constant 0 : index
    %c0_129 = arith.constant 0 : index
    %219 = vector.load %arg21[%c0_128, %c0_129] : memref<1x1xf32, #tpu.memory_space<vmem>>, vector<1x1xf32>
    %220 = vector.broadcast %219 : vector<1x1xf32> to vector<1x16xf32>
    %221 = arith.addf %218, %220 : vector<1x16xf32>
    %222 = vector.broadcast %221 : vector<1x16xf32> to vector<2x16xf32>
    %223 = arith.addf %222, %2 : vector<2x16xf32>
    %cst_130 = arith.constant dense<0xFF800000> : vector<2xf32>
    %224 = vector.multi_reduction <maximumf>, %223, %cst_130 [1] : vector<2x16xf32> to vector<2xf32>
    %225 = vector.shape_cast %224 : vector<2xf32> to vector<2x1xf32>
    %226 = vector.broadcast %225 : vector<2x1xf32> to vector<2x16xf32>
    %227 = arith.subf %223, %226 : vector<2x16xf32>
    %228 = math.exp %227 : vector<2x16xf32>
    %cst_131 = arith.constant dense<0.000000e+00> : vector<2xf32>
    %229 = vector.multi_reduction <add>, %228, %cst_131 [1] : vector<2x16xf32> to vector<2xf32>
    %230 = vector.shape_cast %229 : vector<2xf32> to vector<2x1xf32>
    %231 = tpu.reciprocal %230 {approx = true} : vector<2x1xf32> -> vector<2x1xf32>
    %232 = vector.broadcast %231 : vector<2x1xf32> to vector<2x16xf32>
    %233 = arith.mulf %228, %232 : vector<2x16xf32>
    %cst_132 = arith.constant dense<0.000000e+00> : vector<2x64xf32>
    %234 = tpu.matmul %233, %216, %cst_132 {dimension_numbers = #tpu.dot_dimension_numbers<[1], [0], [0], [1], [0, 0, 1, 1], [], []>} : vector<2x16xf32>, vector<16x64xf32>, vector<2x64xf32> -> vector<2x64xf32>
    %c0_133 = arith.constant 0 : index
    %c0_134 = arith.constant 0 : index
    %235 = vector.load %arg22[%c0_133, %c0_134] : memref<64x32xf32, #tpu.memory_space<vmem>>, vector<64x32xf32>
    %cst_135 = arith.constant dense<0.000000e+00> : vector<2x32xf32>
    %236 = tpu.matmul %234, %235, %cst_135 {dimension_numbers = #tpu.dot_dimension_numbers<[1], [0], [0], [1], [0, 0, 1, 1], [], []>} : vector<2x64xf32>, vector<64x32xf32>, vector<2x32xf32> -> vector<2x32xf32>
    %c0_136 = arith.constant 0 : index
    %c0_137 = arith.constant 0 : index
    %237 = vector.load %arg23[%c0_136, %c0_137] : memref<1x32xf32, #tpu.memory_space<vmem>>, vector<1x32xf32>
    %238 = vector.broadcast %237 : vector<1x32xf32> to vector<2x32xf32>
    %239 = arith.addf %236, %238 : vector<2x32xf32>
    %c0_138 = arith.constant 0 : index
    %c0_139 = arith.constant 0 : index
    %240 = vector.load %arg29[%c0_138, %c0_139] : memref<2x32xf32, #tpu.memory_space<vmem>>, vector<2x32xf32>
    tpu.vector_store %arg29[%c0_138, %c0_139], %239 {strides = array<i32>} : memref<2x32xf32, #tpu.memory_space<vmem>>, vector<2x32xf32>,
    %c0_140 = arith.constant 0 : index
    %c0_141 = arith.constant 0 : index
    %241 = vector.load %arg24[%c0_140, %c0_141] : memref<32x32xf32, #tpu.memory_space<vmem>>, vector<32x32xf32>
    %cst_142 = arith.constant dense<0.000000e+00> : vector<2x32xf32>
    %242 = tpu.matmul %239, %241, %cst_142 {dimension_numbers = #tpu.dot_dimension_numbers<[1], [0], [0], [1], [0, 0, 1, 1], [], []>} : vector<2x32xf32>, vector<32x32xf32>, vector<2x32xf32> -> vector<2x32xf32>
    %c0_143 = arith.constant 0 : index
    %c0_144 = arith.constant 0 : index
    %243 = vector.load %arg25[%c0_143, %c0_144] : memref<1x32xf32, #tpu.memory_space<vmem>>, vector<1x32xf32>
    %244 = vector.broadcast %243 : vector<1x32xf32> to vector<2x32xf32>
    %245 = arith.addf %242, %244 : vector<2x32xf32>
    %cst_145 = arith.constant 0.000000e+00 : f32
    %246 = vector.broadcast %cst_145 : f32 to vector<2x32xf32>
    %247 = arith.maximumf %245, %246 : vector<2x32xf32>
    %c0_146 = arith.constant 0 : index
    %c0_147 = arith.constant 0 : index
    %248 = vector.load %arg26[%c0_146, %c0_147] : memref<1x32xf32, #tpu.memory_space<vmem>>, vector<1x32xf32>
    %249 = vector.broadcast %248 : vector<1x32xf32> to vector<2x32xf32>
    %250 = arith.mulf %247, %249 : vector<2x32xf32>
    %cst_148 = arith.constant dense<0.000000e+00> : vector<2xf32>
    %251 = vector.multi_reduction <add>, %250, %cst_148 [1] : vector<2x32xf32> to vector<2xf32>
    %252 = vector.shape_cast %251 : vector<2xf32> to vector<2x1xf32>
    %c0_149 = arith.constant 0 : index
    %c0_150 = arith.constant 0 : index
    %253 = vector.load %arg27[%c0_149, %c0_150] : memref<1x1xf32, #tpu.memory_space<vmem>>, vector<1x1xf32>
    %254 = vector.broadcast %253 : vector<1x1xf32> to vector<2x1xf32>
    %255 = arith.addf %252, %254 : vector<2x1xf32>
    %c0_151 = arith.constant 0 : index
    %c0_152 = arith.constant 0 : index
    %256 = vector.load %arg28[%c0_151, %c0_152] : memref<2x1xf32, #tpu.memory_space<vmem>>, vector<2x1xf32>
    tpu.vector_store %arg28[%c0_151, %c0_152], %255 {strides = array<i32>} : memref<2x1xf32, #tpu.memory_space<vmem>>, vector<2x1xf32>,
    return
  }
  func.func @transform_0(%arg0: i32) -> (i32, i32) {
    %c0_i32 = arith.constant 0 : i32
    %c0_i32_0 = arith.constant 0 : i32
    %c0_i32_1 = arith.constant 0 : i32
    return %c0_i32, %c0_i32_0 : i32, i32
  }
  func.func @transform_1(%arg0: i32) -> (i32, i32) {
    %c0_i32 = arith.constant 0 : i32
    %c0_i32_0 = arith.constant 0 : i32
    %c0_i32_1 = arith.constant 0 : i32
    return %c0_i32, %c0_i32_0 : i32, i32
  }
  func.func @transform_2(%arg0: i32) -> (i32, i32) {
    %c0_i32 = arith.constant 0 : i32
    %c0_i32_0 = arith.constant 0 : i32
    %c0_i32_1 = arith.constant 0 : i32
    return %c0_i32, %c0_i32_0 : i32, i32
  }
  func.func @transform_3(%arg0: i32) -> (i32, i32) {
    %c0_i32 = arith.constant 0 : i32
    %c0_i32_0 = arith.constant 0 : i32
    %c0_i32_1 = arith.constant 0 : i32
    return %c0_i32, %c0_i32_0 : i32, i32
  }
  func.func @transform_4(%arg0: i32) -> (i32, i32) {
    %c0_i32 = arith.constant 0 : i32
    %c0_i32_0 = arith.constant 0 : i32
    %c0_i32_1 = arith.constant 0 : i32
    return %c0_i32, %c0_i32_0 : i32, i32
  }
  func.func @transform_5(%arg0: i32) -> (i32, i32) {
    %c0_i32 = arith.constant 0 : i32
    %c0_i32_0 = arith.constant 0 : i32
    %c0_i32_1 = arith.constant 0 : i32
    return %c0_i32, %c0_i32_0 : i32, i32
  }
  func.func @transform_6(%arg0: i32) -> (i32, i32) {
    %c0_i32 = arith.constant 0 : i32
    %c0_i32_0 = arith.constant 0 : i32
    %c0_i32_1 = arith.constant 0 : i32
    return %c0_i32, %c0_i32_0 : i32, i32
  }
  func.func @transform_7(%arg0: i32) -> (i32, i32, i32) {
    %c0_i32 = arith.constant 0 : i32
    %c0_i32_0 = arith.constant 0 : i32
    %c0_i32_1 = arith.constant 0 : i32
    %c0_i32_2 = arith.constant 0 : i32
    return %c0_i32, %c0_i32_0, %c0_i32_1 : i32, i32, i32
  }
  func.func @transform_8(%arg0: i32) -> (i32, i32, i32) {
    %c0_i32 = arith.constant 0 : i32
    %c0_i32_0 = arith.constant 0 : i32
    %c0_i32_1 = arith.constant 0 : i32
    %c0_i32_2 = arith.constant 0 : i32
    return %c0_i32, %c0_i32_0, %c0_i32_1 : i32, i32, i32
  }
  func.func @transform_9(%arg0: i32) -> (i32, i32, i32) {
    %c0_i32 = arith.constant 0 : i32
    %c0_i32_0 = arith.constant 0 : i32
    %c0_i32_1 = arith.constant 0 : i32
    %c0_i32_2 = arith.constant 0 : i32
    return %c0_i32, %c0_i32_0, %c0_i32_1 : i32, i32, i32
  }
  func.func @transform_10(%arg0: i32) -> (i32, i32, i32) {
    %c0_i32 = arith.constant 0 : i32
    %c0_i32_0 = arith.constant 0 : i32
    %c0_i32_1 = arith.constant 0 : i32
    %c0_i32_2 = arith.constant 0 : i32
    return %c0_i32, %c0_i32_0, %c0_i32_1 : i32, i32, i32
  }
  func.func @transform_11(%arg0: i32) -> (i32, i32, i32) {
    %c0_i32 = arith.constant 0 : i32
    %c0_i32_0 = arith.constant 0 : i32
    %c0_i32_1 = arith.constant 0 : i32
    %c0_i32_2 = arith.constant 0 : i32
    return %c0_i32, %c0_i32_0, %c0_i32_1 : i32, i32, i32
  }
  func.func @transform_12(%arg0: i32) -> (i32, i32, i32) {
    %c0_i32 = arith.constant 0 : i32
    %c0_i32_0 = arith.constant 0 : i32
    %c0_i32_1 = arith.constant 0 : i32
    %c0_i32_2 = arith.constant 0 : i32
    return %c0_i32, %c0_i32_0, %c0_i32_1 : i32, i32, i32
  }
  func.func @transform_13(%arg0: i32) -> (i32, i32, i32) {
    %c0_i32 = arith.constant 0 : i32
    %c0_i32_0 = arith.constant 0 : i32
    %c0_i32_1 = arith.constant 0 : i32
    %c0_i32_2 = arith.constant 0 : i32
    return %c0_i32, %c0_i32_0, %c0_i32_1 : i32, i32, i32
  }
  func.func @transform_14(%arg0: i32) -> (i32, i32, i32) {
    %c0_i32 = arith.constant 0 : i32
    %c0_i32_0 = arith.constant 0 : i32
    %c0_i32_1 = arith.constant 0 : i32
    %c0_i32_2 = arith.constant 0 : i32
    return %c0_i32, %c0_i32_0, %c0_i32_1 : i32, i32, i32
  }
  func.func @transform_15(%arg0: i32) -> (i32, i32, i32) {
    %c0_i32 = arith.constant 0 : i32
    %c0_i32_0 = arith.constant 0 : i32
    %c0_i32_1 = arith.constant 0 : i32
    %c0_i32_2 = arith.constant 0 : i32
    return %c0_i32, %c0_i32_0, %c0_i32_1 : i32, i32, i32
  }
  func.func @transform_16(%arg0: i32) -> (i32, i32, i32) {
    %c0_i32 = arith.constant 0 : i32
    %c0_i32_0 = arith.constant 0 : i32
    %c0_i32_1 = arith.constant 0 : i32
    %c0_i32_2 = arith.constant 0 : i32
    return %c0_i32, %c0_i32_0, %c0_i32_1 : i32, i32, i32
  }
  func.func @transform_17(%arg0: i32) -> (i32, i32, i32) {
    %c0_i32 = arith.constant 0 : i32
    %c0_i32_0 = arith.constant 0 : i32
    %c0_i32_1 = arith.constant 0 : i32
    %c0_i32_2 = arith.constant 0 : i32
    return %c0_i32, %c0_i32_0, %c0_i32_1 : i32, i32, i32
  }
  func.func @transform_18(%arg0: i32) -> (i32, i32, i32) {
    %c0_i32 = arith.constant 0 : i32
    %c0_i32_0 = arith.constant 0 : i32
    %c0_i32_1 = arith.constant 0 : i32
    %c0_i32_2 = arith.constant 0 : i32
    return %c0_i32, %c0_i32_0, %c0_i32_1 : i32, i32, i32
  }
  func.func @transform_19(%arg0: i32) -> (i32, i32) {
    %c0_i32 = arith.constant 0 : i32
    %c0_i32_0 = arith.constant 0 : i32
    %c0_i32_1 = arith.constant 0 : i32
    return %c0_i32, %c0_i32_0 : i32, i32
  }
  func.func @transform_20(%arg0: i32) -> (i32, i32) {
    %c0_i32 = arith.constant 0 : i32
    %c0_i32_0 = arith.constant 0 : i32
    %c0_i32_1 = arith.constant 0 : i32
    return %c0_i32, %c0_i32_0 : i32, i32
  }
  func.func @transform_21(%arg0: i32) -> (i32, i32) {
    %c0_i32 = arith.constant 0 : i32
    %c0_i32_0 = arith.constant 0 : i32
    %c0_i32_1 = arith.constant 0 : i32
    return %c0_i32, %c0_i32_0 : i32, i32
  }
  func.func @transform_22(%arg0: i32) -> (i32, i32) {
    %c0_i32 = arith.constant 0 : i32
    %c0_i32_0 = arith.constant 0 : i32
    %c0_i32_1 = arith.constant 0 : i32
    return %c0_i32, %c0_i32_0 : i32, i32
  }
  func.func @transform_23(%arg0: i32) -> (i32, i32) {
    %c0_i32 = arith.constant 0 : i32
    %c0_i32_0 = arith.constant 0 : i32
    %c0_i32_1 = arith.constant 0 : i32
    return %c0_i32, %c0_i32_0 : i32, i32
  }
  func.func @transform_24(%arg0: i32) -> (i32, i32) {
    %c0_i32 = arith.constant 0 : i32
    %c0_i32_0 = arith.constant 0 : i32
    %c0_i32_1 = arith.constant 0 : i32
    return %c0_i32, %c0_i32_0 : i32, i32
  }
  func.func @transform_25(%arg0: i32) -> (i32, i32) {
    %c0_i32 = arith.constant 0 : i32
    %c0_i32_0 = arith.constant 0 : i32
    %c0_i32_1 = arith.constant 0 : i32
    return %c0_i32, %c0_i32_0 : i32, i32
  }
  func.func @transform_26(%arg0: i32) -> (i32, i32) {
    %c0_i32 = arith.constant 0 : i32
    %c0_i32_0 = arith.constant 0 : i32
    %c0_i32_1 = arith.constant 0 : i32
    return %c0_i32, %c0_i32_0 : i32, i32
  }
  func.func @transform_27(%arg0: i32) -> (i32, i32) {
    %c0_i32 = arith.constant 0 : i32
    %c0_i32_0 = arith.constant 0 : i32
    %c0_i32_1 = arith.constant 0 : i32
    return %c0_i32, %c0_i32_0 : i32, i32
  }
  func.func @transform_28(%arg0: i32) -> (i32, i32) {
    %c0_i32 = arith.constant 0 : i32
    %c0_i32_0 = arith.constant 0 : i32
    %c0_i32_1 = arith.constant 0 : i32
    return %c0_i32, %c0_i32_0 : i32, i32
  }
}

</mosaic_0001>

<bundles_post_ra>
// kernel: eq.17
= control target key start
LH: loop header
LB: loop body
LE: loop exit
PB: predicated region body
PF: predicated region fallthrough
CT: control target
= control target key end

     0   :  { %vm8_vm0 = vcmask 64512   ;;  %vm14_vm1 = vcmask 130112   ;;  %s42_s0 = inlined_call_operand.vmem [shape: s32[2,8], index: 0, kind: input, shape index: {}]   ;;  %s43_s1 = inlined_call_operand.vmem [shape: s32[16], index: 1, kind: output, shape index: {}]  }
   0x1   :  { %v5_v0 = vld [vmem:[%s42_s0] sm:$0x3]  ;;  %s25_s0 = smov 8  }
   0x2   :  { %6 = vst [vmem:[#allocation1] sm:$0x3] %v5_v0 }
   0x9   :  { %v11_v1 = vld [vmem:[#allocation1 + $0x1] sm:$0x1]   ;;  %v7_v2 = vld [vmem:[#allocation1] sm:$0x1]  }
   0xa   :  { %12 = vrot.lane.b32.xlu0 %v11_v1, %s25_s0  ;;  %9 = vst.msk [vmem:[#allocation0] sm:$0x1] %vm8_vm0, %v7_v2  }
  0x7c   :  { %v13_v3 = vpop.permute.xlu0 %12  }
  0x7d   :  { %15 = vst.msk [vmem:[#allocation0] sm:$0x1] %vm14_vm1, %v13_v3  }
  0x84   :  { %v20_v4 = vld [vmem:[#allocation0] sm:$0x1] }
  0x85   :  { %23 = vst [vmem:[%s43_s1] sm:$0x1] %v20_v4 }

// kernel: mdlformer_forward.1
= control target key start
LH: loop header
LB: loop body
LE: loop exit
PB: predicated region body
PF: predicated region fallthrough
CT: control target
= control target key end

     0   :  { %s3650_s0 = inlined_call_operand.vmem [shape: f32[16,96], index: 0, kind: input, shape index: {}]   ;;  %s3651_s1 = inlined_call_operand.vmem [shape: f32[16,16], index: 1, kind: input, shape index: {}]   ;;  %s3652_s2 = inlined_call_operand.vmem [shape: f32[2,16], index: 2, kind: input, shape index: {}]   ;;  %s3653_s3 = inlined_call_operand.vmem [shape: f32[96,96], index: 3, kind: input, shape index: {}]   ;;  %s3654_s4 = inlined_call_operand.vmem [shape: f32[1,96], index: 4, kind: input, shape index: {}]   ;;  %s3655_s5 = inlined_call_operand.vmem [shape: f32[96,64], index: 5, kind: input, shape index: {}]   ;;  %s3656_s6 = inlined_call_operand.vmem [shape: f32[1,64], index: 6, kind: input, shape index: {}]   ;;  %s3657_s7 = inlined_call_operand.vmem [shape: f32[2,64,192], index: 7, kind: input, shape index: {}]   ;;  %s3658_s8 = inlined_call_operand.vmem [shape: f32[2,1,192], index: 8, kind: input, shape index: {}]   ;;  %s3659_s9 = inlined_call_operand.vmem [shape: f32[2,64,64], index: 9, kind: input, shape index: {}]   ;;  %s3660_s10 = inlined_call_operand.vmem [shape: f32[2,1,64], index: 10, kind: input, shape index: {}]   ;;  %s3661_s11 = inlined_call_operand.vmem [shape: f32[2,1,64], index: 11, kind: input, shape index: {}]   ;;  %s3662_s12 = inlined_call_operand.vmem [shape: f32[2,1,64], index: 12, kind: input, shape index: {}]   ;;  %s3663_s13 = inlined_call_operand.vmem [shape: f32[2,64,256], index: 13, kind: input, shape index: {}]   ;;  %s3664_s14 = inlined_call_operand.vmem [shape: f32[2,1,256], index: 14, kind: input, shape index: {}]   ;;  %s3665_s15 = inlined_call_operand.vmem [shape: f32[2,256,64], index: 15, kind: input, shape index: {}]   ;;  %s3666_s16 = inlined_call_operand.vmem [shape: f32[2,1,64], index: 16, kind: input, shape index: {}]   ;;  %s3667_s17 = inlined_call_operand.vmem [shape: f32[2,1,64], index: 17, kind: input, shape index: {}]   ;;  %s3668_s18 = inlined_call_operand.vmem [shape: f32[2,1,64], index: 18, kind: input, shape index: {}]   ;;  %s3669_s19 = inlined_call_operand.vmem [shape: f32[1,64], index: 19, kind: input, shape index: {}]   ;;  %s3670_s20 = inlined_call_operand.<no memory space> [shape: f32[1,1], index: 20, kind: input, shape index: {}]   ;;  %s3671_s21 = inlined_call_operand.vmem [shape: f32[64,32], index: 21, kind: input, shape index: {}]   ;;  %s3672_s22 = inlined_call_operand.vmem [shape: f32[1,32], index: 22, kind: input, shape index: {}]   ;;  %s3673_s23 = inlined_call_operand.vmem [shape: f32[32,32], index: 23, kind: input, shape index: {}]   ;;  %s3674_s24 = inlined_call_operand.vmem [shape: f32[1,32], index: 24, kind: input, shape index: {}]   ;;  %s3675_s25 = inlined_call_operand.vmem [shape: f32[1,32], index: 25, kind: input, shape index: {}]   ;;  %s3676_s27 = inlined_call_operand.vmem [shape: f32[2,1], index: 27, kind: output, shape index: {0}]   ;;  %s3677_s28 = inlined_call_operand.hbm [shape: f32[2,32], index: 28, kind: output, shape index: {1}]   ;;  %s3678_s26 = inlined_call_operand.<no memory space> [shape: f32[1,1], index: 26, kind: input, shape index: {}]  }
   0x1   :  { %3689 = sst [smem:[#allocation7_spill]] %s3650_s0  ;;  %v34_v0 = vstv %s3670_s20  ;;  %v36_v1 = vstv %s3678_s26 }
   0x2   :  { %3690 = sst [smem:[#allocation8_spill]] %s3651_s1  ;;  %35 = vst [vmem:[#allocation2] sm:$0x1] %v34_v0  ;;  %37 = vst [vmem:[#allocation3] sm:$0x1] %v36_v1 }
   0x3   :  { %3691 = sst [smem:[#allocation9_spill]] %s3652_s2 }
   0x4   :  { %3692 = sst [smem:[#allocation10_spill]] %s3653_s3 }
   0x5   :  { %3693 = sst [smem:[#allocation11_spill]] %s3654_s4 }
   0x6   :  { %3694 = sst [smem:[#allocation12_spill]] %s3655_s5 }
   0x7   :  { %3695 = sst [smem:[#allocation13_spill]] %s3656_s6 }
   0x8   :  { %3696 = sst [smem:[#allocation14_spill]] %s3657_s7 }
   0x9   :  { %3697 = sst [smem:[#allocation15_spill]] %s3658_s8 }
   0xa   :  { %3698 = sst [smem:[#allocation16_spill]] %s3659_s9 }
   0xb   :  { %3699 = sst [smem:[#allocation17_spill]] %s3660_s10 }
   0xc   :  { %3700 = sst [smem:[#allocation18_spill]] %s3661_s11 }
   0xd   :  { %3701 = sst [smem:[#allocation19_spill]] %s3662_s12 }
   0xe   :  { %s3702_s10 = sld [smem:[#allocation10_spill]]  ;;  %vm117_vm0 = vcmask 785408  }
   0xf   :  { %s3703_s1 = sld [smem:[#allocation7_spill]] }
  0x10   :  { %s3704_s5 = sld [smem:[#allocation12_spill]] }
  0x14   :  { %v109_v2 = vld [vmem:[%s3702_s10 + $0x58] sm:$0xff]  ;;  %v108_v3 = vld [vmem:[%s3702_s10 + $0x50] sm:$0xff]  ;;  %v107_v4 = vld [vmem:[%s3702_s10 + $0x48] sm:$0xff] }
  0x15   :  { %2461 = vmatprep.subr.mxu0 %v109_v2  ;;  %v106_v5 = vld [vmem:[%s3702_s10 + $0x40] sm:$0xff]  ;;  %v105_v9 = vld [vmem:[%s3702_s10 + $0x38] sm:$0xff] }
  0x16   :  { %2462 = vmatpush3.msra.mxu0 %v109_v2  ;;  %v93_v6 = vld [vmem:[%s3703_s1] sm:$0xff]  ;;  %v212_v7 = vld [vmem:[%s3704_s5 + $0x58] sm:$0xff]  ;;  %v211_v8 = vld [vmem:[%s3704_s5 + $0x50] sm:$0xff] }
  0x17   :  { %2463 = vmatprep.subr.mxu0 %v108_v3  ;;  %2485 = vmatprep.mubr.msk.f32.mxu0 %vm117_vm0, %v93_v6  ;;  %v210_v10 = vld [vmem:[%s3704_s5 + $0x48] sm:$0xff] }
  0x18   :  { %2464 = vmatpush3.msra.mxu0 %v108_v3  ;;  %2488 = vmatprep.subr.mxu1 %v212_v7 }
  0x19   :  { %2465 = vmatprep.subr.mxu0 %v107_v4  ;;  %2489 = vmatpush3.msra.mxu1 %v212_v7 }
  0x1a   :  { %2466 = vmatpush3.msra.mxu0 %v107_v4 }
  0x1b   :  { %2467 = vmatprep.subr.mxu0 %v106_v5 }
  0x1c   :  { %38 = vsyncpa [#allocation5], 0  ;;  %2468 = vmatpush3.msra.mxu0 %v106_v5  ;;  %v104_v11 = vld [vmem:[%s3702_s10 + $0x30] sm:$0xff]  ;;  %2490 = vmatprep.subr.mxu1 %v211_v8  ;;  %v209_v12 = vld [vmem:[%s3704_s5 + $0x40] sm:$0xff]  ;;  %s3705_s4 = sld [smem:[#allocation14_spill]]  ;;  %v2690_v51 = vmov 0.0   ;;  %v321_v59 = vlaneseq }
  0x1d   :  { %2469 = vmatprep.subr.mxu0 %v105_v9  ;;  %2491 = vmatpush3.msra.mxu1 %v211_v8  ;;  %v103_v13 = vld [vmem:[%s3702_s10 + $0x28] sm:$0xff]  ;;  %v208_v14 = vld [vmem:[%s3704_s5 + $0x38] sm:$0xff]  ;;  %v102_v15 = vld [vmem:[%s3702_s10 + $0x20] sm:$0xff]  ;;  %s3706_s30 = sld [smem:[#allocation11_spill]]  ;;  %vm331_vm1 = vcmask 523264   ;;  %s2691_s11 = smov 64  }
  0x1e   :  { %2470 = vmatpush3.msra.mxu0 %v105_v9  ;;  %2492 = vmatprep.subr.mxu1 %v210_v10  ;;  %v207_v16 = vld [vmem:[%s3704_s5 + $0x30] sm:$0xff]  ;;  %v101_v17 = vld [vmem:[%s3702_s10 + $0x18] sm:$0xff]  ;;  %v206_v18 = vld [vmem:[%s3704_s5 + $0x28] sm:$0xff]  ;;  %s3707_s3 = sld [smem:[#allocation13_spill]]  ;;  %v322_v60 = vshrl.u32 %v321_v59, 7  ;;  %vm504_vm2 = vcmask 130048  }
  0x1f   :  { %2471 = vmatprep.subr.mxu0 %v104_v11  ;;  %2493 = vmatpush3.msra.mxu1 %v210_v10  ;;  %v100_v19 = vld [vmem:[%s3702_s10 + $0x10] sm:$0xff]  ;;  %v205_v20 = vld [vmem:[%s3704_s5 + $0x20] sm:$0xff]  ;;  %v99_v21 = vld [vmem:[%s3702_s10 + $0x8] sm:$0xff]  ;;  %s3709_s2 = sld [smem:[#allocation8_spill]]  ;;  %vm2692_vm3 = vmmov 0   ;;  %vm1869_vm4 = vcmask 123904  }
  0x20   :  { %2472 = vmatpush3.msra.mxu0 %v104_v11  ;;  %2494 = vmatprep.subr.mxu1 %v209_v12  ;;  %v98_v22 = vld [vmem:[%s3702_s10] sm:$0xff]  ;;  %v94_v23 = vld [vmem:[%s3703_s1 + $0x8] sm:$0xff]  ;;  %v204_v24 = vld [vmem:[%s3704_s5 + $0x18] sm:$0xff]  ;;  %v2997_v61 = vsub.s32 0, %v322_v60  ;;  %v3006_v5 = vsub.s32 1, %v322_v60  ;;  %s3710_s12 = sld [smem:[#allocation16_spill]] }
  0x21   :  { %2473 = vmatprep.subr.mxu0 %v103_v13  ;;  %2495 = vmatpush3.msra.mxu1 %v209_v12  ;;  %v203_v25 = vld [vmem:[%s3704_s5 + $0x10] sm:$0xff]  ;;  %v202_v26 = vld [vmem:[%s3704_s5 + $0x8] sm:$0xff]  ;;  %v201_v27 = vld [vmem:[%s3704_s5] sm:$0xff]  ;;  %s3708_s5 = sld [smem:[#allocation15_spill]]  ;;  %vm2055_vm5 = vcmask 261120   ;;  %vm2042_vm6 = vcmask 254976  }
  0x22   :  { %2474 = vmatpush3.msra.mxu0 %v103_v13  ;;  %2496 = vmatprep.subr.mxu1 %v208_v14  ;;  %v318_v28 = vld [vmem:[%s3705_s4 + $0x78] sm:$0xff]  ;;  %v317_v29 = vld [vmem:[%s3705_s4 + $0x70] sm:$0xff]  ;;  %v316_v30 = vld [vmem:[%s3705_s4 + $0x68] sm:$0xff]  ;;  %s3712_s9 = sld [smem:[#allocation18_spill]] }
  0x23   :  { %2475 = vmatprep.subr.mxu0 %v102_v15  ;;  %2497 = vmatpush3.msra.mxu1 %v208_v14  ;;  %v315_v31 = vld [vmem:[%s3705_s4 + $0x60] sm:$0xff]  ;;  %v314_v32 = vld [vmem:[%s3705_s4 + $0x58] sm:$0xff]  ;;  %v313_v33 = vld [vmem:[%s3705_s4 + $0x50] sm:$0xff]  ;;  %s3713_s0 = sld [smem:[#allocation19_spill]] }
  0x24   :  { %2476 = vmatpush3.msra.mxu0 %v102_v15  ;;  %2498 = vmatprep.subr.mxu1 %v207_v16  ;;  %v312_v34 = vld [vmem:[%s3705_s4 + $0x48] sm:$0xff]  ;;  %v311_v35 = vld [vmem:[%s3705_s4 + $0x40] sm:$0xff]  ;;  %v310_v36 = vld [vmem:[%s3705_s4 + $0x38] sm:$0xff]  ;;  %s3714_s26 = sld [smem:[#allocation9_spill]] }
  0x25   :  { %2477 = vmatprep.subr.mxu0 %v101_v17  ;;  %2499 = vmatpush3.msra.mxu1 %v207_v16  ;;  %v2169_v37 = vld [vmem:[%s3706_s30] ss:$0 sm:$0xff]  ;;  %v309_v44 = vld [vmem:[%s3705_s4 + $0x30] sm:$0xff]  ;;  %v308_v45 = vld [vmem:[%s3705_s4 + $0x28] sm:$0xff] }
  0x26   :  { %2478 = vmatpush3.msra.mxu0 %v101_v17  ;;  %2500 = vmatprep.subr.mxu1 %v206_v18  ;;  %v307_v46 = vld [vmem:[%s3705_s4 + $0x20] sm:$0xff]  ;;  %v306_v47 = vld [vmem:[%s3705_s4 + $0x18] sm:$0xff]  ;;  %v305_v48 = vld [vmem:[%s3705_s4 + $0x10] sm:$0xff] }
  0x27   :  { %2479 = vmatprep.subr.mxu0 %v100_v19  ;;  %2501 = vmatpush3.msra.mxu1 %v206_v18  ;;  %v304_v49 = vld [vmem:[%s3705_s4 + $0x8] sm:$0xff]  ;;  %v303_v50 = vld [vmem:[%s3705_s4] sm:$0xff] }
  0x28   :  { %2480 = vmatpush3.msra.mxu0 %v100_v19  ;;  %2502 = vmatprep.subr.mxu1 %v205_v20  ;;  %v2172_v53 = vld [vmem:[%s3707_s3] ss:$0 sm:$0xff]  ;;  %v3022_v14 = vld [vmem:[%s3709_s2 + $0x8] sm:$0xff]  ;;  %s3711_s3 = sld [smem:[#allocation17_spill]] }
  0x29   :  { %2481 = vmatprep.subr.mxu0 %v99_v21  ;;  %2503 = vmatpush3.msra.mxu1 %v205_v20  ;;  %v319_v62 = vld [vmem:[%s3708_s5] sm:$0x3] }
  0x2a   :  { %2482 = vmatpush3.msra.mxu0 %v99_v21  ;;  %2504 = vmatprep.subr.mxu1 %v204_v24  ;;  %v324_v63 = vrot.slane %v319_v62, %v2997_v61  ;;  %v328_v8 = vrot.slane %v319_v62, %v3006_v5  ;;  %v3017_v13 = vld [vmem:[%s3709_s2] sm:$0xff]  ;;  %v769_v62 = vld [vmem:[%s3663_s13 + $0x70] sm:$0xff] }
  0x2b   :  { %2483 = vmatprep.subr.mxu0 %v98_v22  ;;  %2505 = vmatpush3.msra.mxu1 %v204_v24 }
  0x2c   :  { %2484 = vmatpush3.msra.mxu0 %v98_v22  ;;  %2506 = vmatprep.subr.mxu1 %v203_v25 }
  0x2d   :  { %2486 = vmatmul.mubr.msk.f32.vlgmr.msra.gmra.mxu0 %vm117_vm0, %v94_v23  ;;  %2507 = vmatpush3.msra.mxu1 %v203_v25 }
  0x2e   :  { %2508 = vmatprep.subr.mxu1 %v202_v26  ;;  %354 = vmatprep.subr.mxu0 %v318_v28 }
  0x2f   :  { %2509 = vmatpush3.msra.mxu1 %v202_v26  ;;  %355 = vmatpush1.msra.mxu0 %v317_v29 }
  0x30   :  { %2510 = vmatprep.subr.mxu1 %v201_v27  ;;  %356 = vmatprep.subr.mxu0 %v316_v30  ;;  %v615_v30 = vld [vmem:[%s3710_s12 + $0x38] sm:$0xff] }
  0x31   :  { %2511 = vmatpush3.msra.mxu1 %v201_v27  ;;  %357 = vmatpush1.msra.mxu0 %v315_v31 }
  0x32   :  { %358 = vmatprep.subr.mxu0 %v314_v32  ;;  %402 = vmatprep.mubr.f32.mxu0 %v2690_v51 }
  0x33   :  { %359 = vmatpush1.msra.mxu0 %v313_v33 }
  0x34   :  { %360 = vmatprep.subr.mxu0 %v312_v34 }
  0x35   :  { %361 = vmatpush1.msra.mxu0 %v311_v35 }
  0x36   :  { %362 = vmatprep.subr.mxu0 %v310_v36 }
  0x37   :  { %363 = vmatpush1.msra.mxu0 %v309_v44 }
  0x38   :  { %364 = vmatprep.subr.mxu0 %v308_v45 }
  0x39   :  { %365 = vmatpush1.msra.mxu0 %v307_v46  ;;  %v2183_v46 = vld [vmem:[%s3711_s3] ss:$0 sm:$0xff] }
  0x3a   :  { %366 = vmatprep.subr.mxu0 %v306_v47 }
  0x3b   :  { %367 = vmatpush1.msra.mxu0 %v305_v48 }
  0x3c   :  { %368 = vmatprep.subr.mxu0 %v304_v49 }
  0x3d   :  { %369 = vmatpush1.msra.mxu0 %v303_v50 }
  0xed   :  { %v2487_v38 = vpop.f32.mrf.mxu0 }
  0xee   :  { %v196_v39 = vadd.f32 %v2487_v38, %v2169_v37  ;;  %v613_v38 = vld [vmem:[%s3710_s12 + $0x28] sm:$0xff] }
  0xef   :  { %v190_v40 = vpop.f32.mrf.mxu0 }
  0xf0   :  { %v191_v41 = vadd.f32 %v2169_v37, %v190_v40  ;;  %v200_v43 = vmax.f32 %v196_v39, 0.0  ;;  %v614_v37 = vld [vmem:[%s3710_s12 + $0x30] sm:$0xff]  ;;  %v612_v39 = vld [vmem:[%s3710_s12 + $0x20] sm:$0xff]  ;;  %v611_v40 = vld [vmem:[%s3710_s12 + $0x18] sm:$0xff] }
  0xf2   :  { %v199_v42 = vmax.f32 %v191_v41, 0.0  ;;  %v610_v41 = vld [vmem:[%s3710_s12 + $0x10] sm:$0xff] }
  0xf4   :  { %2512 = vmatprep.mubr.msk.f32.mxu1 %vm117_vm0, %v199_v42  ;;  %v609_v42 = vld [vmem:[%s3710_s12 + $0x8] sm:$0xff] }
  0xf5   :  { %2513 = vmatmul.mubr.msk.f32.vlgmr.msra.gmra.mxu1 %vm117_vm0, %v200_v43  ;;  %v608_v43 = vld [vmem:[%s3710_s12] sm:$0xff] }
 0x1b5   :  { %v2514_v52 = vpop.f32.mrf.mxu1 }
 0x1b6   :  { %v2985_v56 = vadd.f32 %v2514_v52, %v2172_v53 }
 0x1b7   :  { %v292_v54 = vpop.f32.mrf.mxu1 }
 0x1b8   :  { %v2983_v55 = vadd.f32 %v2172_v53, %v292_v54  ;;  %v302_v58 = vmax.f32 %v2985_v56, 0.0 }
 0x1ba   :  { %v301_v57 = vmax.f32 %v2983_v55, 0.0 }
 0x1bc   :  { %2175 = vmatmul.mubr.msk.f32.vlgmr.msra.gmra.mxu0 %vm331_vm1, %v301_v57 }
 0x1bd   :  { %408 = vmatprep.mubr.f32.mxu0 %v2690_v51 }
 0x1c0   :  { %2176 = vmatmul.mubr.msk.f32.gmra.mxu0 %vm331_vm1, %v302_v58 }
 0x1c1   :  { %853 = vmatprep.mubr.f32.mxu0 %v2690_v51 }
 0x27c   :  { %v404_v0 = vpop.f32.mrf.mxu0 }
 0x27d   :  { %v405_v1 = vadd.f32 %v404_v0, %v324_v63  ;;  %v767_v0 = vld [vmem:[%s3663_s13 + $0x60] sm:$0xff] }
 0x27e   :  { %v406_v2 = vpop.f32.mrf.mxu0 }
 0x27f   :  { %2519 = vmatprep.mubr.msk.f32.mxu1 %vm331_vm1, %v405_v1  ;;  %v407_v11 = vadd.f32 %v406_v2, %v328_v8  ;;  %v765_v2 = vld [vmem:[%s3663_s13 + $0x50] sm:$0xff] }
 0x280   :  { %v410_v3 = vpop.f32.mrf.mxu0 }
 0x281   :  { %v411_v4 = vadd.f32 %v410_v3, %v324_v63  ;;  %v768_v63 = vld [vmem:[%s3663_s13 + $0x68] sm:$0xff] }
 0x282   :  { %v412_v7 = vpop.f32.mrf.mxu0  ;;  %v764_v3 = vld [vmem:[%s3663_s13 + $0x48] sm:$0xff] }
 0x283   :  { %419 = vrot.lane.b32.xlu0 %v411_v4, %s2691_s11  ;;  %v413_v10 = vadd.f32 %v412_v7, %v328_v8  ;;  %v761_v7 = vld [vmem:[%s3663_s13 + $0x30] sm:$0xff]  ;;  %v760_v8 = vld [vmem:[%s3663_s13 + $0x28] sm:$0xff] }
 0x287   :  { %417 = vrot.lane.b32.xlu0 %v405_v1, %s2691_s11  ;;  %v766_v1 = vld [vmem:[%s3663_s13 + $0x58] sm:$0xff] }
 0x2f5   :  { %v420_v6 = vpop.permute.xlu0 %419 }
 0x2f6   :  { %2515 = vmatprep.subr.msk.mxu1 %vm331_vm1, %v420_v6 }
 0x2f7   :  { %2516 = vmatpush3.xpose.msk.msra.mxu1 %vm331_vm1, %v420_v6  ;;  %v762_v6 = vld [vmem:[%s3663_s13 + $0x38] sm:$0xff] }
 0x2f9   :  { %v418_v9 = vpop.permute.xlu0 %417 }
 0x2fa   :  { %2517 = vmatprep.subr.msk.mxu1 %vm331_vm1, %v418_v9 }
 0x2fb   :  { %2518 = vmatpush3.xpose.msk.msra.mxu1 %vm331_vm1, %v418_v9  ;;  %v759_v9 = vld [vmem:[%s3663_s13 + $0x20] sm:$0xff] }
 0x2fc   :  { %2522 = vmatprep.subr.mxu1 %v413_v10 }
 0x2fe   :  { %2520 = vmatmul.mubr.msk.f32.vlgmr.msra.gmra.mxu1 %vm331_vm1, %v411_v4  ;;  %v763_v4 = vld [vmem:[%s3663_s13 + $0x40] sm:$0xff] }
 0x2ff   :  { %2523 = vmatpush3.msra.mxu1 %v413_v10  ;;  %v758_v10 = vld [vmem:[%s3663_s13 + $0x18] sm:$0xff] }
 0x300   :  { %2524 = vmatprep.subr.mxu1 %v407_v11 }
 0x301   :  { %2525 = vmatpush3.msra.mxu1 %v407_v11  ;;  %v757_v11 = vld [vmem:[%s3663_s13 + $0x10] sm:$0xff] }
 0x302   :  { %2529 = vmatprep.subr.mxu1 %v615_v30 }
 0x3be   :  { %v2521_v12 = vpop.f32.mrf.mxu1 }
 0x3bf   :  { %v501_v17 = vadd.f32 %v2521_v12, %v3022_v14  ;;  %v756_v12 = vld [vmem:[%s3663_s13 + $0x8] sm:$0xff] }
 0x3c0   :  { %v495_v15 = vpop.f32.mrf.mxu1 }
 0x3c1   :  { %v496_v16 = vadd.f32 %v495_v15, %v3017_v13  ;;  %v508_v19 = vsel %vm504_vm2, %v501_v17, -inf  ;;  %v755_v15 = vld [vmem:[%s3663_s13] sm:$0xff] }
 0x3c3   :  { %v505_v18 = vsel %vm504_vm2, %v496_v16, -inf }
 0x3c4   :  { %506 = vmax.xlane.f32.xlu1 %v505_v18  ;;  %v900_v18 = vld [vmem:[%s3665_s15 + $0xf0] sm:$0xff] }
 0x3c8   :  { %509 = vmax.xlane.f32.xlu1 %v508_v19  ;;  %v884_v19 = vld [vmem:[%s3665_s15 + $0x70] sm:$0xff] }
 0x44d   :  { %v507_v20 = vpop.xlane.xlu1 %506 }
 0x44e   :  { %v511_v21 = vsub.f32 %v496_v16, %v507_v20  ;;  %v901_v16 = vld [vmem:[%s3665_s15 + $0xf8] sm:$0xff]  ;;  %v899_v20 = vld [vmem:[%s3665_s15 + $0xe8] sm:$0xff] }
 0x450   :  { %v513_v22 = vmul.f32 1.442695, %v511_v21  ;;  %v883_v21 = vld [vmem:[%s3665_s15 + $0x68] sm:$0xff] }
 0x451   :  { %v510_v23 = vpop.xlane.xlu1 %509 }
 0x452   :  { %2632 = vpow2.f32 %v513_v22  ;;  %v512_v24 = vsub.f32 %v501_v17, %v510_v23  ;;  %v885_v17 = vld [vmem:[%s3665_s15 + $0x78] sm:$0xff]  ;;  %v898_v22 = vld [vmem:[%s3665_s15 + $0xe0] sm:$0xff] }
 0x453   :  { %v882_v23 = vld [vmem:[%s3665_s15 + $0x60] sm:$0xff] }
 0x454   :  { %v515_v25 = vmul.f32 1.442695, %v512_v24  ;;  %v897_v24 = vld [vmem:[%s3665_s15 + $0xd8] sm:$0xff] }
 0x456   :  { %2634 = vpow2.f32 %v515_v25  ;;  %v881_v25 = vld [vmem:[%s3665_s15 + $0x58] sm:$0xff] }
 0x45f   :  { %v2633_v26 = vpop.eup %2632 }
 0x460   :  { %v517_v27 = vsel %vm504_vm2, %v2633_v26, 0.0 }
 0x461   :  { %518 = vadd.xlane.f32.xlu0 %v517_v27  ;;  %v880_v27 = vld [vmem:[%s3665_s15 + $0x50] sm:$0xff] }
 0x463   :  { %v2635_v28 = vpop.eup %2634 }
 0x464   :  { %v520_v29 = vsel %vm504_vm2, %v2635_v28, 0.0 }
 0x465   :  { %521 = vadd.xlane.f32.xlu1 %v520_v29  ;;  %v879_v29 = vld [vmem:[%s3665_s15 + $0x48] sm:$0xff] }
 0x4ea   :  { %v519_v31 = vpop.xlane.xlu0 %518 }
 0x4eb   :  { %2636 = vrcp.f32 %v519_v31  ;;  %v878_v31 = vld [vmem:[%s3665_s15 + $0x40] sm:$0xff] }
 0x4ee   :  { %v522_v32 = vpop.xlane.xlu1 %521 }
 0x4ef   :  { %2638 = vrcp.f32 %v522_v32  ;;  %v893_v32 = vld [vmem:[%s3665_s15 + $0xb8] sm:$0xff] }
 0x4f8   :  { %v2637_v33 = vpop.eup %2636 }
 0x4f9   :  { %v525_v34 = vmul.f32 %v2637_v33, %v2633_v26  ;;  %v896_v26 = vld [vmem:[%s3665_s15 + $0xd0] sm:$0xff]  ;;  %v877_v33 = vld [vmem:[%s3665_s15 + $0x38] sm:$0xff] }
 0x4fb   :  { %2526 = vmatprep.mubr.msk.f32.mxu1 %vm504_vm2, %v525_v34  ;;  %v892_v34 = vld [vmem:[%s3665_s15 + $0xb0] sm:$0xff] }
 0x4fc   :  { %v2639_v35 = vpop.eup %2638 }
 0x4fd   :  { %v526_v36 = vmul.f32 %v2639_v35, %v2635_v28  ;;  %v895_v28 = vld [vmem:[%s3665_s15 + $0xc8] sm:$0xff]  ;;  %v876_v35 = vld [vmem:[%s3665_s15 + $0x30] sm:$0xff] }
 0x4ff   :  { %2527 = vmatmul.mubr.msk.f32.vlgmr.msra.gmra.mxu1 %vm504_vm2, %v526_v36  ;;  %v891_v36 = vld [vmem:[%s3665_s15 + $0xa8] sm:$0xff] }
 0x500   :  { %2530 = vmatpush3.msra.mxu1 %v615_v30  ;;  %v894_v30 = vld [vmem:[%s3665_s15 + $0xc0] sm:$0xff] }
 0x501   :  { %2531 = vmatprep.subr.mxu1 %v614_v37 }
 0x502   :  { %2532 = vmatpush3.msra.mxu1 %v614_v37  ;;  %v875_v37 = vld [vmem:[%s3665_s15 + $0x28] sm:$0xff] }
 0x503   :  { %2533 = vmatprep.subr.mxu1 %v613_v38 }
 0x504   :  { %2534 = vmatpush3.msra.mxu1 %v613_v38  ;;  %v890_v38 = vld [vmem:[%s3665_s15 + $0xa0] sm:$0xff] }
 0x505   :  { %2535 = vmatprep.subr.mxu1 %v612_v39 }
 0x506   :  { %2536 = vmatpush3.msra.mxu1 %v612_v39  ;;  %v874_v39 = vld [vmem:[%s3665_s15 + $0x20] sm:$0xff] }
 0x507   :  { %2537 = vmatprep.subr.mxu1 %v611_v40 }
 0x508   :  { %2538 = vmatpush3.msra.mxu1 %v611_v40 }
 0x509   :  { %2539 = vmatprep.subr.mxu1 %v610_v41 }
 0x50a   :  { %2540 = vmatpush3.msra.mxu1 %v610_v41 }
 0x50b   :  { %2541 = vmatprep.subr.mxu1 %v609_v42 }
 0x50c   :  { %2542 = vmatpush3.msra.mxu1 %v609_v42 }
 0x50d   :  { %2543 = vmatprep.subr.mxu1 %v608_v43 }
 0x50e   :  { %2544 = vmatpush3.msra.mxu1 %v608_v43 }
 0x50f   :  { %2347 = vmatprep.subr.mxu1 %v901_v16 }
 0x5bf   :  { %v2528_v44 = vpop.f32.mrf.mxu1 }
 0x5c1   :  { %v599_v45 = vpop.f32.mrf.mxu1 }
 0x5c2   :  { %2545 = vmatprep.mubr.msk.f32.mxu1 %vm331_vm1, %v599_v45 }
 0x5c3   :  { %2546 = vmatmul.mubr.msk.f32.vlgmr.msra.gmra.mxu1 %vm331_vm1, %v2528_v44 }
 0x5c4   :  { %2348 = vmatpush3.msra.mxu1 %v885_v17 }
 0x5c5   :  { %2349 = vmatprep.subr.mxu1 %v900_v18 }
 0x5c6   :  { %2350 = vmatpush3.msra.mxu1 %v884_v19 }
 0x5c7   :  { %2351 = vmatprep.subr.mxu1 %v899_v20 }
 0x5c8   :  { %2352 = vmatpush3.msra.mxu1 %v883_v21 }
 0x5c9   :  { %2353 = vmatprep.subr.mxu1 %v898_v22 }
 0x5ca   :  { %2354 = vmatpush3.msra.mxu1 %v882_v23 }
 0x5cb   :  { %2355 = vmatprep.subr.mxu1 %v897_v24 }
 0x5cc   :  { %2356 = vmatpush3.msra.mxu1 %v881_v25 }
 0x5cd   :  { %2357 = vmatprep.subr.mxu1 %v896_v26 }
 0x5ce   :  { %2358 = vmatpush3.msra.mxu1 %v880_v27 }
 0x5cf   :  { %2359 = vmatprep.subr.mxu1 %v895_v28 }
 0x5d0   :  { %2360 = vmatpush3.msra.mxu1 %v879_v29 }
 0x5d1   :  { %2361 = vmatprep.subr.mxu1 %v894_v30 }
 0x5d2   :  { %2362 = vmatpush3.msra.mxu1 %v878_v31  ;;  %v2190_v31 = vld [vmem:[%s3666_s16] ss:$0 sm:$0xff] }
 0x5d3   :  { %2363 = vmatprep.subr.mxu1 %v893_v32 }
 0x5d4   :  { %2364 = vmatpush3.msra.mxu1 %v877_v33 }
 0x5d5   :  { %2365 = vmatprep.subr.mxu1 %v892_v34 }
 0x5d6   :  { %2366 = vmatpush3.msra.mxu1 %v876_v35 }
 0x5d7   :  { %2367 = vmatprep.subr.mxu1 %v891_v36 }
 0x5d8   :  { %2368 = vmatpush3.msra.mxu1 %v875_v37 }
 0x5d9   :  { %2369 = vmatprep.subr.mxu1 %v890_v38 }
 0x5da   :  { %2370 = vmatpush3.msra.mxu1 %v874_v39 }
 0x683   :  { %v2547_v47 = vpop.f32.mrf.mxu1 }
 0x684   :  { %v701_v48 = vadd.f32 %v2547_v47, %v2183_v46 }
 0x685   :  { %v695_v49 = vpop.f32.mrf.mxu1 }
 0x686   :  { %v3063_v50 = vadd.f32 %v701_v48, %v302_v58  ;;  %v696_v52 = vadd.f32 %v2183_v46, %v695_v49 }
 0x688   :  { %v3067_v53 = vadd.f32 %v696_v52, %v301_v57  ;;  %v711_v54 = vsel %vm331_vm1, %v3063_v50, 0.0  ;;  %v718_v58 = vmul.f32 %v3063_v50, %v3063_v50  ;;  %v770_v57 = vld [vmem:[%s3663_s13 + $0x78] sm:$0xff] }
 0x689   :  { %712 = vadd.xlane.f32.xlu1 %v711_v54  ;;  %805 = vmatprep.subr.mxu0 %v770_v57 }
 0x68a   :  { %v708_v59 = vsel %vm331_vm1, %v3067_v53, 0.0  ;;  %v717_v60 = vmul.f32 %v3067_v53, %v3067_v53  ;;  %v722_v55 = vsel %vm331_vm1, %v718_v58, 0.0  ;;  %806 = vmatpush1.msra.mxu0 %v769_v62  ;;  %v2187_v62 = vld [vmem:[%s3713_s0] ss:$0 sm:$0xff] }
 0x68b   :  { %807 = vmatprep.subr.mxu0 %v768_v63 }
 0x68c   :  { %v719_v56 = vsel %vm331_vm1, %v717_v60, 0.0  ;;  %808 = vmatpush1.msra.mxu0 %v767_v0 }
 0x68d   :  { %709 = vadd.xlane.f32.xlu1 %v708_v59  ;;  %809 = vmatprep.subr.mxu0 %v766_v1 }
 0x68e   :  { %810 = vmatpush1.msra.mxu0 %v765_v2 }
 0x68f   :  { %811 = vmatprep.subr.mxu0 %v764_v3 }
 0x690   :  { %812 = vmatpush1.msra.mxu0 %v763_v4 }
 0x691   :  { %720 = vadd.xlane.f32.xlu1 %v719_v56  ;;  %813 = vmatprep.subr.mxu0 %v762_v6  ;;  %v889_v6 = vld [vmem:[%s3665_s15 + $0x98] sm:$0xff] }
 0x692   :  { %814 = vmatpush1.msra.mxu0 %v761_v7  ;;  %2371 = vmatprep.subr.mxu1 %v889_v6  ;;  %v888_v7 = vld [vmem:[%s3665_s15 + $0x90] sm:$0xff] }
 0x693   :  { %815 = vmatprep.subr.mxu0 %v760_v8  ;;  %v872_v8 = vld [vmem:[%s3665_s15 + $0x10] sm:$0xff] }
 0x694   :  { %816 = vmatpush1.msra.mxu0 %v759_v9  ;;  %v887_v9 = vld [vmem:[%s3665_s15 + $0x88] sm:$0xff] }
 0x695   :  { %723 = vadd.xlane.f32.xlu1 %v722_v55  ;;  %817 = vmatprep.subr.mxu0 %v758_v10  ;;  %v2186_v55 = vld [vmem:[%s3712_s9] ss:$0 sm:$0xff]  ;;  %v871_v10 = vld [vmem:[%s3665_s15 + $0x8] sm:$0xff] }
 0x696   :  { %818 = vmatpush1.msra.mxu0 %v757_v11  ;;  %v886_v11 = vld [vmem:[%s3665_s15 + $0x80] sm:$0xff] }
 0x697   :  { %819 = vmatprep.subr.mxu0 %v756_v12  ;;  %v870_v12 = vld [vmem:[%s3665_s15] sm:$0xff] }
 0x698   :  { %820 = vmatpush1.msra.mxu0 %v755_v15  ;;  %v771_v15 = vld [vmem:[%s3664_s14] sm:$0x3] }
 0x699   :  { %v776_v16 = vrot.slane %v771_v15, %v2997_v61  ;;  %v780_v17 = vrot.slane %v771_v15, %v3006_v5 }
 0x712   :  { %v713_v40 = vpop.xlane.xlu1 %712 }
 0x713   :  { %v716_v44 = vmul.f32 0.015625, %v713_v40 }
 0x715   :  { %v728_v49 = vmul.f32 %v716_v44, %v716_v44  ;;  %v732_v63 = vsub.f32 %v3063_v50, %v716_v44  ;;  %v873_v50 = vld [vmem:[%s3665_s15 + $0x18] sm:$0xff] }
 0x716   :  { %v710_v41 = vpop.xlane.xlu1 %709  ;;  %2372 = vmatpush3.msra.mxu1 %v873_v50 }
 0x717   :  { %v715_v42 = vmul.f32 0.015625, %v710_v41  ;;  %2373 = vmatprep.subr.mxu1 %v888_v7 }
 0x718   :  { %2374 = vmatpush3.msra.mxu1 %v872_v8 }
 0x719   :  { %v727_v45 = vmul.f32 %v715_v42, %v715_v42  ;;  %v731_v56 = vsub.f32 %v3067_v53, %v715_v42  ;;  %2375 = vmatprep.subr.mxu1 %v887_v9 }
 0x71a   :  { %v721_v43 = vpop.xlane.xlu1 %720  ;;  %2376 = vmatpush3.msra.mxu1 %v871_v10 }
 0x71b   :  { %v725_v46 = vmul.f32 0.015625, %v721_v43  ;;  %2377 = vmatprep.subr.mxu1 %v886_v11 }
 0x71c   :  { %2378 = vmatpush3.msra.mxu1 %v870_v12 }
 0x71d   :  { %v729_v47 = vsub.f32 %v725_v46, %v727_v45 }
 0x71e   :  { %v724_v48 = vpop.xlane.xlu1 %723 }
 0x71f   :  { %v733_v52 = vadd.f32 1e-05, %v729_v47  ;;  %v726_v54 = vmul.f32 0.015625, %v724_v48  ;;  %v2208_v47 = vld [vmem:[%s3705_s4 + $0xf8] sm:$0xff]  ;;  %v2207_v48 = vld [vmem:[%s3705_s4 + $0xf0] sm:$0xff] }
 0x720   :  { %1086 = vmatprep.subr.mxu0 %v2208_v47 }
 0x721   :  { %2640 = vrsqrt.f32 %v733_v52  ;;  %v730_v59 = vsub.f32 %v726_v54, %v728_v49  ;;  %v2206_v49 = vld [vmem:[%s3705_s4 + $0xe8] sm:$0xff]  ;;  %v2205_v52 = vld [vmem:[%s3705_s4 + $0xe0] sm:$0xff]  ;;  %v2204_v54 = vld [vmem:[%s3705_s4 + $0xd8] sm:$0xff] }
 0x723   :  { %v734_v60 = vadd.f32 1e-05, %v730_v59  ;;  %v2203_v59 = vld [vmem:[%s3705_s4 + $0xd0] sm:$0xff] }
 0x725   :  { %2642 = vrsqrt.f32 %v734_v60  ;;  %v2202_v60 = vld [vmem:[%s3705_s4 + $0xc8] sm:$0xff] }
 0x72e   :  { %v2641_v58 = vpop.eup %2640 }
 0x72f   :  { %v737_v57 = vmul.f32 %v2641_v58, %v731_v56  ;;  %v2201_v56 = vld [vmem:[%s3705_s4 + $0xc0] sm:$0xff]  ;;  %v2200_v58 = vld [vmem:[%s3705_s4 + $0xb8] sm:$0xff] }
 0x731   :  { %v745_v0 = vmul.f32 %v2186_v55, %v737_v57  ;;  %v2198_v57 = vld [vmem:[%s3705_s4 + $0xa8] sm:$0xff] }
 0x732   :  { %v2643_v1 = vpop.eup %2642 }
 0x733   :  { %v753_v2 = vadd.f32 %v2187_v62, %v745_v0  ;;  %v738_v3 = vmul.f32 %v2643_v1, %v732_v63  ;;  %v2196_v63 = vld [vmem:[%s3705_s4 + $0x98] sm:$0xff]  ;;  %v2195_v0 = vld [vmem:[%s3705_s4 + $0x90] sm:$0xff]  ;;  %v2194_v1 = vld [vmem:[%s3705_s4 + $0x88] sm:$0xff] }
 0x735   :  { %2188 = vmatmul.mubr.msk.f32.vlgmr.msra.gmra.mxu0 %vm331_vm1, %v753_v2  ;;  %v746_v4 = vmul.f32 %v2186_v55, %v738_v3  ;;  %v2199_v55 = vld [vmem:[%s3705_s4 + $0xb0] sm:$0xff] }
 0x736   :  { %859 = vmatprep.mubr.f32.mxu0 %v2690_v51  ;;  %1087 = vmatpush1.msra.mxu0 %v2207_v48 }
 0x737   :  { %v754_v53 = vadd.f32 %v2187_v62, %v746_v4  ;;  %1088 = vmatprep.subr.mxu0 %v2206_v49  ;;  %v2197_v62 = vld [vmem:[%s3705_s4 + $0xa0] sm:$0xff] }
 0x738   :  { %1089 = vmatpush1.msra.mxu0 %v2205_v52 }
 0x739   :  { %2189 = vmatmul.mubr.msk.f32.gmra.mxu0 %vm331_vm1, %v754_v53  ;;  %1090 = vmatprep.subr.mxu0 %v2204_v54 }
 0x73a   :  { %1134 = vmatprep.mubr.f32.mxu0 %v2690_v51  ;;  %1091 = vmatpush1.msra.mxu0 %v2203_v59 }
 0x73b   :  { %1092 = vmatprep.subr.mxu0 %v2202_v60 }
 0x73c   :  { %1093 = vmatpush1.msra.mxu0 %v2201_v56 }
 0x73d   :  { %1094 = vmatprep.subr.mxu0 %v2200_v58 }
 0x73e   :  { %1095 = vmatpush1.msra.mxu0 %v2199_v55 }
 0x73f   :  { %1096 = vmatprep.subr.mxu0 %v2198_v57  ;;  %v2225_v57 = vld [vmem:[%s3710_s12 + $0x78] sm:$0xff] }
 0x740   :  { %1097 = vmatpush1.msra.mxu0 %v2197_v62 }
 0x741   :  { %1098 = vmatprep.subr.mxu0 %v2196_v63 }
 0x742   :  { %1099 = vmatpush1.msra.mxu0 %v2195_v0 }
 0x743   :  { %1100 = vmatprep.subr.mxu0 %v2194_v1 }
 0x7f5   :  { %v855_v18 = vpop.f32.mrf.mxu0 }
 0x7f6   :  { %v856_v19 = vadd.f32 %v855_v18, %v776_v16 }
 0x7f7   :  { %v857_v20 = vpop.f32.mrf.mxu0 }
 0x7f8   :  { %v858_v21 = vadd.f32 %v857_v20, %v780_v17  ;;  %v866_v24 = vmax.f32 %v856_v19, 0.0  ;;  %v2191_v20 = vld [vmem:[%s3667_s17] ss:$0 sm:$0xff] }
 0x7f9   :  { %v861_v22 = vpop.f32.mrf.mxu0 }
 0x7fa   :  { %v867_v23 = vmax.f32 %v858_v21, 0.0  ;;  %v862_v25 = vadd.f32 %v861_v22, %v776_v16  ;;  %v2192_v22 = vld [vmem:[%s3668_s18] ss:$0 sm:$0xff] }
 0x7fb   :  { %v863_v26 = vpop.f32.mrf.mxu0 }
 0x7fc   :  { %v864_v27 = vadd.f32 %v863_v26, %v780_v17  ;;  %973 = vmatprep.mubr.f32.mxu1 %v867_v23  ;;  %v868_v29 = vmax.f32 %v862_v25, 0.0 }
 0x7fd   :  { %974 = vmatmul.mubr.f32.vlgmr.msra.gmra.mxu1 %v866_v24 }
 0x7fe   :  { %v869_v28 = vmax.f32 %v864_v27, 0.0 }
 0x800   :  { %978 = vmatprep.mubr.f32.mxu1 %v869_v28 }
 0x801   :  { %979 = vmatmul.mubr.f32.gmra.mxu1 %v868_v29 }
 0x802   :  { %1589 = vmatprep.mubr.f32.mxu1 %v2690_v51 }
 0x8bd   :  { %v2379_v30 = vpop.f32.mrf.mxu1 }
 0x8bf   :  { %v2380_v32 = vpop.f32.mrf.mxu1 }
 0x8c0   :  { %v2381_v33 = vadd.f32 %v2380_v32, %v2379_v30  ;;  %v2209_v30 = vld [vmem:[%s3708_s5 + $0x2] sm:$0x3] }
 0x8c1   :  { %v2382_v34 = vpop.f32.mrf.mxu1 }
 0x8c2   :  { %v976_v35 = vadd.f32 %v2381_v33, %v2190_v31 }
 0x8c3   :  { %v2383_v36 = vpop.f32.mrf.mxu1 }
 0x8c4   :  { %v3244_v37 = vadd.f32 %v976_v35, %v753_v2  ;;  %v2384_v38 = vadd.f32 %v2383_v36, %v2382_v34  ;;  %v2193_v2 = vld [vmem:[%s3705_s4 + $0x80] sm:$0xff] }
 0x8c5   :  { %1101 = vmatpush1.msra.mxu0 %v2193_v2 }
 0x8c6   :  { %v981_v39 = vadd.f32 %v2384_v38, %v2190_v31  ;;  %v988_v40 = vsel %vm331_vm1, %v3244_v37, 0.0  ;;  %v996_v41 = vmul.f32 %v3244_v37, %v3244_v37  ;;  %v1057_v31 = vrot.slane %v2209_v30, %v2997_v61 }
 0x8c7   :  { %989 = vadd.xlane.f32.xlu1 %v988_v40  ;;  %v1061_v40 = vrot.slane %v2209_v30, %v3006_v5  ;;  %v2246_v30 = vld [vmem:[%s3663_s13 + $0xe0] sm:$0xff] }
 0x8c8   :  { %v3250_v42 = vadd.f32 %v981_v39, %v754_v53  ;;  %v998_v43 = vsel %vm331_vm1, %v996_v41, 0.0 }
 0x8ca   :  { %v997_v44 = vmul.f32 %v3250_v42, %v3250_v42  ;;  %v991_v46 = vsel %vm331_vm1, %v3250_v42, 0.0 }
 0x8cb   :  { %999 = vadd.xlane.f32.xlu1 %v998_v43 }
 0x8cc   :  { %v1001_v45 = vsel %vm331_vm1, %v997_v44, 0.0 }
 0x8cd   :  { %1002 = vadd.xlane.f32.xlu0 %v1001_v45 }
 0x8cf   :  { %992 = vadd.xlane.f32.xlu1 %v991_v46 }
 0x950   :  { %v990_v3 = vpop.xlane.xlu1 %989 }
 0x951   :  { %v994_v4 = vmul.f32 0.015625, %v990_v3 }
 0x953   :  { %v1006_v6 = vmul.f32 %v994_v4, %v994_v4  ;;  %v1010_v18 = vsub.f32 %v3244_v37, %v994_v4  ;;  %v2224_v4 = vld [vmem:[%s3710_s12 + $0x70] sm:$0xff] }
 0x954   :  { %v1000_v53 = vpop.xlane.xlu1 %999 }
 0x955   :  { %v1004_v50 = vmul.f32 0.015625, %v1000_v53  ;;  %v2223_v53 = vld [vmem:[%s3710_s12 + $0x68] sm:$0xff] }
 0x956   :  { %v1003_v8 = vpop.xlane.xlu0 %1002 }
 0x957   :  { %v1008_v7 = vsub.f32 %v1004_v50, %v1006_v6  ;;  %v1005_v12 = vmul.f32 0.015625, %v1003_v8  ;;  %v2222_v6 = vld [vmem:[%s3710_s12 + $0x60] sm:$0xff]  ;;  %v2221_v50 = vld [vmem:[%s3710_s12 + $0x58] sm:$0xff]  ;;  %v2219_v8 = vld [vmem:[%s3710_s12 + $0x48] sm:$0xff] }
 0x958   :  { %v993_v9 = vpop.xlane.xlu1 %992 }
 0x959   :  { %v1012_v10 = vadd.f32 1e-05, %v1008_v7  ;;  %v995_v11 = vmul.f32 0.015625, %v993_v9  ;;  %v2220_v7 = vld [vmem:[%s3710_s12 + $0x50] sm:$0xff]  ;;  %v2218_v9 = vld [vmem:[%s3710_s12 + $0x40] sm:$0xff] }
 0x95b   :  { %2644 = vrsqrt.f32 %v1012_v10  ;;  %v1007_v15 = vmul.f32 %v995_v11, %v995_v11  ;;  %v1011_v25 = vsub.f32 %v3250_v42, %v995_v11 }
 0x95d   :  { %v1009_v16 = vsub.f32 %v1005_v12, %v1007_v15  ;;  %v2227_v12 = vld [vmem:[%s3711_s3 + $0x1] ss:$0 sm:$0xff] }
 0x95f   :  { %v1013_v17 = vadd.f32 1e-05, %v1009_v16 }
 0x961   :  { %2646 = vrsqrt.f32 %v1013_v17 }
 0x968   :  { %v2645_v19 = vpop.eup %2644 }
 0x969   :  { %v1016_v21 = vmul.f32 %v2645_v19, %v1010_v18 }
 0x96b   :  { %v1024_v23 = vmul.f32 %v2191_v20, %v1016_v21 }
 0x96d   :  { %v3313_v24 = vadd.f32 %v2192_v22, %v1024_v23 }
 0x96e   :  { %v2647_v26 = vpop.eup %2646 }
 0x96f   :  { %v1017_v27 = vmul.f32 %v2647_v26, %v1011_v25  ;;  %2210 = vmatmul.mubr.msk.f32.vlgmr.msra.gmra.mxu0 %vm331_vm1, %v3313_v24 }
 0x970   :  { %1140 = vmatprep.mubr.f32.mxu0 %v2690_v51 }
 0x971   :  { %v1025_v28 = vmul.f32 %v2191_v20, %v1017_v27  ;;  %v2249_v27 = vld [vmem:[%s3663_s13 + $0xf8] sm:$0xff] }
 0x972   :  { %1541 = vmatprep.subr.mxu1 %v2249_v27 }
 0x973   :  { %v3319_v29 = vadd.f32 %v2192_v22, %v1025_v28  ;;  %v2248_v28 = vld [vmem:[%s3663_s13 + $0xf0] sm:$0xff] }
 0x974   :  { %1542 = vmatpush1.msra.mxu1 %v2248_v28 }
 0x975   :  { %2211 = vmatmul.mubr.msk.f32.gmra.mxu0 %vm331_vm1, %v3319_v29 }
 0xa2f   :  { %v1136_v32 = vpop.f32.mrf.mxu0 }
 0xa30   :  { %v1137_v33 = vadd.f32 %v1136_v32, %v1057_v31  ;;  %v2244_v32 = vld [vmem:[%s3663_s13 + $0xd0] sm:$0xff] }
 0xa31   :  { %v1138_v34 = vpop.f32.mrf.mxu0 }
 0xa32   :  { %1149 = vrot.lane.b32.xlu0 %v1137_v33, %s2691_s11  ;;  %2552 = vmatprep.mubr.msk.f32.mxu0 %vm331_vm1, %v1137_v33  ;;  %v1139_v42 = vadd.f32 %v1138_v34, %v1061_v40  ;;  %v2243_v33 = vld [vmem:[%s3663_s13 + $0xc8] sm:$0xff]  ;;  %v2242_v34 = vld [vmem:[%s3663_s13 + $0xc0] sm:$0xff] }
 0xa35   :  { %v1142_v35 = vpop.f32.mrf.mxu0 }
 0xa36   :  { %v1143_v36 = vadd.f32 %v1142_v35, %v1057_v31  ;;  %v2245_v31 = vld [vmem:[%s3663_s13 + $0xd8] sm:$0xff] }
 0xa37   :  { %v1144_v38 = vpop.f32.mrf.mxu0  ;;  %v2241_v35 = vld [vmem:[%s3663_s13 + $0xb8] sm:$0xff] }
 0xa38   :  { %1151 = vrot.lane.b32.xlu1 %v1143_v36, %s2691_s11  ;;  %v1145_v41 = vadd.f32 %v1144_v38, %v1061_v40  ;;  %v2238_v38 = vld [vmem:[%s3663_s13 + $0xa0] sm:$0xff]  ;;  %v2236_v40 = vld [vmem:[%s3663_s13 + $0x90] sm:$0xff] }
 0xaa4   :  { %v1150_v39 = vpop.permute.xlu0 %1149 }
 0xaaa   :  { %v1152_v37 = vpop.permute.xlu1 %1151 }
 0xaab   :  { %2548 = vmatprep.subr.msk.mxu0 %vm331_vm1, %v1152_v37 }
 0xaac   :  { %2549 = vmatpush3.xpose.msk.msra.mxu0 %vm331_vm1, %v1152_v37  ;;  %v2239_v37 = vld [vmem:[%s3663_s13 + $0xa8] sm:$0xff] }
 0xaad   :  { %2550 = vmatprep.subr.msk.mxu0 %vm331_vm1, %v1150_v39 }
 0xab0   :  { %2551 = vmatpush3.xpose.msk.msra.mxu0 %vm331_vm1, %v1150_v39  ;;  %v2237_v39 = vld [vmem:[%s3663_s13 + $0x98] sm:$0xff] }
 0xab1   :  { %2555 = vmatprep.subr.mxu0 %v1145_v41 }
 0xab3   :  { %2553 = vmatmul.mubr.msk.f32.vlgmr.msra.gmra.mxu0 %vm331_vm1, %v1143_v36  ;;  %v2240_v36 = vld [vmem:[%s3663_s13 + $0xb0] sm:$0xff] }
 0xab4   :  { %2556 = vmatpush3.msra.mxu0 %v1145_v41  ;;  %v2235_v41 = vld [vmem:[%s3663_s13 + $0x88] sm:$0xff] }
 0xab5   :  { %2557 = vmatprep.subr.mxu0 %v1139_v42 }
 0xab6   :  { %2558 = vmatpush3.msra.mxu0 %v1139_v42  ;;  %v2234_v42 = vld [vmem:[%s3663_s13 + $0x80] sm:$0xff] }
 0xab7   :  { %2562 = vmatprep.subr.mxu0 %v2225_v57 }
 0xb73   :  { %v2554_v43 = vpop.f32.mrf.mxu0 }
 0xb74   :  { %v1233_v44 = vadd.f32 %v2554_v43, %v3022_v14  ;;  %v2284_v43 = vld [vmem:[%s3665_s15 + $0x1f8] sm:$0xff] }
 0xb75   :  { %v1227_v45 = vpop.f32.mrf.mxu0 }
 0xb76   :  { %v1228_v46 = vadd.f32 %v1227_v45, %v3017_v13  ;;  %v1239_v47 = vsel %vm504_vm2, %v1233_v44, -inf  ;;  %v2283_v45 = vld [vmem:[%s3665_s15 + $0x1f0] sm:$0xff] }
 0xb77   :  { %1240 = vmax.xlane.f32.xlu0 %v1239_v47  ;;  %v2282_v47 = vld [vmem:[%s3665_s15 + $0x1e8] sm:$0xff] }
 0xb78   :  { %v1236_v48 = vsel %vm504_vm2, %v1228_v46, -inf }
 0xb79   :  { %1237 = vmax.xlane.f32.xlu1 %v1236_v48  ;;  %v2266_v48 = vld [vmem:[%s3665_s15 + $0x168] sm:$0xff] }
 0xc00   :  { %v1241_v49 = vpop.xlane.xlu0 %1240 }
 0xc01   :  { %v1243_v52 = vsub.f32 %v1233_v44, %v1241_v49  ;;  %v2268_v44 = vld [vmem:[%s3665_s15 + $0x178] sm:$0xff]  ;;  %v2281_v49 = vld [vmem:[%s3665_s15 + $0x1e0] sm:$0xff] }
 0xc02   :  { %v1238_v54 = vpop.xlane.xlu1 %1237 }
 0xc03   :  { %v1246_v59 = vmul.f32 1.442695, %v1243_v52  ;;  %v1242_v60 = vsub.f32 %v1228_v46, %v1238_v54  ;;  %v2267_v46 = vld [vmem:[%s3665_s15 + $0x170] sm:$0xff]  ;;  %v2265_v52 = vld [vmem:[%s3665_s15 + $0x160] sm:$0xff]  ;;  %v2280_v54 = vld [vmem:[%s3665_s15 + $0x1d8] sm:$0xff] }
 0xc05   :  { %2648 = vpow2.f32 %v1246_v59  ;;  %v1244_v56 = vmul.f32 1.442695, %v1242_v60  ;;  %v2264_v59 = vld [vmem:[%s3665_s15 + $0x158] sm:$0xff]  ;;  %v2279_v60 = vld [vmem:[%s3665_s15 + $0x1d0] sm:$0xff] }
 0xc07   :  { %2650 = vpow2.f32 %v1244_v56  ;;  %v2263_v56 = vld [vmem:[%s3665_s15 + $0x150] sm:$0xff] }
 0xc12   :  { %v2649_v58 = vpop.eup %2648 }
 0xc13   :  { %v1251_v14 = vsel %vm504_vm2, %v2649_v58, 0.0 }
 0xc14   :  { %v2651_v55 = vpop.eup %2650  ;;  %1252 = vadd.xlane.f32.xlu0 %v1251_v14  ;;  %v2262_v14 = vld [vmem:[%s3665_s15 + $0x148] sm:$0xff] }
 0xc15   :  { %v1248_v13 = vsel %vm504_vm2, %v2651_v55, 0.0 }
 0xc16   :  { %1249 = vadd.xlane.f32.xlu1 %v1248_v13  ;;  %v2261_v13 = vld [vmem:[%s3665_s15 + $0x140] sm:$0xff] }
 0xc9d   :  { %v1253_v62 = vpop.xlane.xlu0 %1252 }
 0xc9e   :  { %2652 = vrcp.f32 %v1253_v62  ;;  %v2260_v62 = vld [vmem:[%s3665_s15 + $0x138] sm:$0xff] }
 0xc9f   :  { %v1250_v63 = vpop.xlane.xlu1 %1249 }
 0xca0   :  { %2654 = vrcp.f32 %v1250_v63  ;;  %v2275_v63 = vld [vmem:[%s3665_s15 + $0x1b0] sm:$0xff] }
 0xcab   :  { %v2653_v0 = vpop.eup %2652 }
 0xcac   :  { %v1257_v3 = vmul.f32 %v2653_v0, %v2649_v58  ;;  %v2278_v58 = vld [vmem:[%s3665_s15 + $0x1c8] sm:$0xff]  ;;  %v2259_v0 = vld [vmem:[%s3665_s15 + $0x130] sm:$0xff] }
 0xcad   :  { %v2655_v1 = vpop.eup %2654 }
 0xcae   :  { %v1256_v2 = vmul.f32 %v2655_v1, %v2651_v55  ;;  %v2277_v55 = vld [vmem:[%s3665_s15 + $0x1c0] sm:$0xff]  ;;  %v2274_v1 = vld [vmem:[%s3665_s15 + $0x1a8] sm:$0xff] }
 0xcb0   :  { %2559 = vmatprep.mubr.msk.f32.mxu0 %vm504_vm2, %v1256_v2  ;;  %v2258_v2 = vld [vmem:[%s3665_s15 + $0x128] sm:$0xff] }
 0xcb1   :  { %2560 = vmatmul.mubr.msk.f32.vlgmr.msra.gmra.mxu0 %vm504_vm2, %v1257_v3  ;;  %v2273_v3 = vld [vmem:[%s3665_s15 + $0x1a0] sm:$0xff] }
 0xcb2   :  { %2563 = vmatpush3.msra.mxu0 %v2225_v57  ;;  %v2276_v57 = vld [vmem:[%s3665_s15 + $0x1b8] sm:$0xff] }
 0xcb3   :  { %2564 = vmatprep.subr.mxu0 %v2224_v4 }
 0xcb4   :  { %2565 = vmatpush3.msra.mxu0 %v2224_v4  ;;  %v2257_v4 = vld [vmem:[%s3665_s15 + $0x120] sm:$0xff] }
 0xcb5   :  { %2566 = vmatprep.subr.mxu0 %v2223_v53 }
 0xcb6   :  { %2567 = vmatpush3.msra.mxu0 %v2223_v53 }
 0xcb7   :  { %2568 = vmatprep.subr.mxu0 %v2222_v6 }
 0xcb8   :  { %2569 = vmatpush3.msra.mxu0 %v2222_v6 }
 0xcb9   :  { %2570 = vmatprep.subr.mxu0 %v2221_v50 }
 0xcba   :  { %2571 = vmatpush3.msra.mxu0 %v2221_v50 }
 0xcbb   :  { %2572 = vmatprep.subr.mxu0 %v2220_v7 }
 0xcbc   :  { %2573 = vmatpush3.msra.mxu0 %v2220_v7 }
 0xcbd   :  { %2574 = vmatprep.subr.mxu0 %v2219_v8 }
 0xcbe   :  { %2575 = vmatpush3.msra.mxu0 %v2219_v8 }
 0xcbf   :  { %2576 = vmatprep.subr.mxu0 %v2218_v9 }
 0xcc0   :  { %2577 = vmatpush3.msra.mxu0 %v2218_v9 }
 0xcc1   :  { %2403 = vmatprep.subr.mxu0 %v2284_v43 }
 0xd71   :  { %v2561_v10 = vpop.f32.mrf.mxu0 }
 0xd73   :  { %v1330_v11 = vpop.f32.mrf.mxu0 }
 0xd74   :  { %2578 = vmatprep.mubr.msk.f32.mxu0 %vm331_vm1, %v1330_v11 }
 0xd75   :  { %2579 = vmatmul.mubr.msk.f32.vlgmr.msra.gmra.mxu0 %vm331_vm1, %v2561_v10 }
 0xd76   :  { %2404 = vmatpush3.msra.mxu0 %v2268_v44 }
 0xd77   :  { %2405 = vmatprep.subr.mxu0 %v2283_v45 }
 0xd78   :  { %2406 = vmatpush3.msra.mxu0 %v2267_v46 }
 0xd79   :  { %2407 = vmatprep.subr.mxu0 %v2282_v47 }
 0xd7a   :  { %2408 = vmatpush3.msra.mxu0 %v2266_v48 }
 0xd7b   :  { %2409 = vmatprep.subr.mxu0 %v2281_v49 }
 0xd7c   :  { %2410 = vmatpush3.msra.mxu0 %v2265_v52 }
 0xd7d   :  { %2411 = vmatprep.subr.mxu0 %v2280_v54 }
 0xd7e   :  { %2412 = vmatpush3.msra.mxu0 %v2264_v59 }
 0xd7f   :  { %2413 = vmatprep.subr.mxu0 %v2279_v60 }
 0xd80   :  { %2414 = vmatpush3.msra.mxu0 %v2263_v56 }
 0xd81   :  { %2415 = vmatprep.subr.mxu0 %v2278_v58 }
 0xd82   :  { %2416 = vmatpush3.msra.mxu0 %v2262_v14 }
 0xd83   :  { %2417 = vmatprep.subr.mxu0 %v2277_v55 }
 0xd84   :  { %2418 = vmatpush3.msra.mxu0 %v2261_v13 }
 0xd85   :  { %2419 = vmatprep.subr.mxu0 %v2276_v57 }
 0xd86   :  { %2420 = vmatpush3.msra.mxu0 %v2260_v62 }
 0xd87   :  { %2421 = vmatprep.subr.mxu0 %v2275_v63 }
 0xd88   :  { %2422 = vmatpush3.msra.mxu0 %v2259_v0 }
 0xd89   :  { %2423 = vmatprep.subr.mxu0 %v2274_v1 }
 0xd8a   :  { %2424 = vmatpush3.msra.mxu0 %v2258_v2 }
 0xd8b   :  { %2425 = vmatprep.subr.mxu0 %v2273_v3 }
 0xd8c   :  { %2426 = vmatpush3.msra.mxu0 %v2257_v4 }
 0xe35   :  { %v2580_v15 = vpop.f32.mrf.mxu0 }
 0xe36   :  { %v1434_v16 = vadd.f32 %v2580_v15, %v2227_v12 }
 0xe37   :  { %v1428_v17 = vpop.f32.mrf.mxu0 }
 0xe38   :  { %v1429_v18 = vadd.f32 %v2227_v12, %v1428_v17  ;;  %v3374_v19 = vadd.f32 %v1434_v16, %v3319_v29  ;;  %v2247_v29 = vld [vmem:[%s3663_s13 + $0xe8] sm:$0xff] }
 0xe39   :  { %1543 = vmatprep.subr.mxu1 %v2247_v29 }
 0xe3a   :  { %v3377_v20 = vadd.f32 %v1429_v18, %v3313_v24  ;;  %v1452_v25 = vmul.f32 %v3374_v19, %v3374_v19  ;;  %v1446_v26 = vsel %vm331_vm1, %v3374_v19, 0.0  ;;  %1544 = vmatpush1.msra.mxu1 %v2246_v30 }
 0xe3b   :  { %1545 = vmatprep.subr.mxu1 %v2245_v31 }
 0xe3c   :  { %v1443_v21 = vsel %vm331_vm1, %v3377_v20, 0.0  ;;  %v1451_v22 = vmul.f32 %v3377_v20, %v3377_v20  ;;  %v1456_v24 = vsel %vm331_vm1, %v1452_v25, 0.0  ;;  %1546 = vmatpush1.msra.mxu1 %v2244_v32  ;;  %v2232_v25 = vld [vmem:[%s3712_s9 + $0x1] ss:$0 sm:$0xff] }
 0xe3d   :  { %1444 = vadd.xlane.f32.xlu1 %v1443_v21  ;;  %1547 = vmatprep.subr.mxu1 %v2243_v33  ;;  %v2272_v33 = vld [vmem:[%s3665_s15 + $0x198] sm:$0xff] }
 0xe3e   :  { %v1453_v23 = vsel %vm331_vm1, %v1451_v22, 0.0  ;;  %1548 = vmatpush1.msra.mxu1 %v2242_v34  ;;  %2427 = vmatprep.subr.mxu0 %v2272_v33  ;;  %v2271_v34 = vld [vmem:[%s3665_s15 + $0x190] sm:$0xff] }
 0xe3f   :  { %1454 = vadd.xlane.f32.xlu0 %v1453_v23  ;;  %1549 = vmatprep.subr.mxu1 %v2241_v35  ;;  %v2255_v35 = vld [vmem:[%s3665_s15 + $0x110] sm:$0xff] }
 0xe40   :  { %1550 = vmatpush1.msra.mxu1 %v2240_v36  ;;  %v2270_v36 = vld [vmem:[%s3665_s15 + $0x188] sm:$0xff] }
 0xe41   :  { %1447 = vadd.xlane.f32.xlu1 %v1446_v26  ;;  %1551 = vmatprep.subr.mxu1 %v2239_v37  ;;  %v2254_v37 = vld [vmem:[%s3665_s15 + $0x108] sm:$0xff] }
 0xe42   :  { %1552 = vmatpush1.msra.mxu1 %v2238_v38  ;;  %v2269_v38 = vld [vmem:[%s3665_s15 + $0x180] sm:$0xff] }
 0xe43   :  { %1457 = vadd.xlane.f32.xlu0 %v1456_v24  ;;  %1553 = vmatprep.subr.mxu1 %v2237_v39  ;;  %v2233_v24 = vld [vmem:[%s3713_s0 + $0x1] ss:$0 sm:$0xff] }
 0xe44   :  { %1554 = vmatpush1.msra.mxu1 %v2236_v40  ;;  %v2253_v39 = vld [vmem:[%s3665_s15 + $0x100] sm:$0xff] }
 0xe45   :  { %1555 = vmatprep.subr.mxu1 %v2235_v41  ;;  %v2250_v40 = vld [vmem:[%s3664_s14 + $0x2] sm:$0x3] }
 0xe46   :  { %1556 = vmatpush1.msra.mxu1 %v2234_v42  ;;  %v1512_v41 = vrot.slane %v2250_v40, %v2997_v61  ;;  %v1516_v42 = vrot.slane %v2250_v40, %v3006_v5  ;;  %v2286_v5 = vld [vmem:[%s3666_s16 + $0x1] ss:$0 sm:$0xff] }
 0xe47   :  { %2581 = vmatprep.subr.mxu1 %v2690_v51 }
 0xec6   :  { %v1445_v53 = vpop.xlane.xlu1 %1444 }
 0xec7   :  { %v1449_v6 = vmul.f32 0.015625, %v1445_v53 }
 0xec8   :  { %v1455_v50 = vpop.xlane.xlu0 %1454 }
 0xec9   :  { %v1461_v7 = vmul.f32 %v1449_v6, %v1449_v6  ;;  %v1459_v8 = vmul.f32 0.015625, %v1455_v50  ;;  %v1465_v22 = vsub.f32 %v3377_v20, %v1449_v6 }
 0xeca   :  { %v1448_v9 = vpop.xlane.xlu1 %1447 }
 0xecb   :  { %v1463_v10 = vsub.f32 %v1459_v8, %v1461_v7  ;;  %v1450_v11 = vmul.f32 0.015625, %v1448_v9  ;;  %v1775_v8 = vld [vmem:[#allocation2] sm:$0x1]  ;;  %v2693_v9 = vmov 0  }
 0xecc   :  { %v1458_v12 = vpop.xlane.xlu0 %1457  ;;  %2630 = vset.pattern.permute.xlu1 %v2693_v9  ;;  %2631 = vset.pattern.permute.xlu0 %v2693_v9 }
 0xecd   :  { %v1467_v15 = vadd.f32 1e-05, %v1463_v10  ;;  %v1462_v16 = vmul.f32 %v1450_v11, %v1450_v11  ;;  %v1460_v17 = vmul.f32 0.015625, %v1458_v12  ;;  %v1466_v27 = vsub.f32 %v3374_v19, %v1450_v11  ;;  %v2256_v19 = vld [vmem:[%s3665_s15 + $0x118] sm:$0xff] }
 0xece   :  { %2428 = vmatpush3.msra.mxu0 %v2256_v19 }
 0xecf   :  { %2656 = vrsqrt.f32 %v1467_v15  ;;  %v1464_v18 = vsub.f32 %v1460_v17, %v1462_v16  ;;  %2429 = vmatprep.subr.mxu0 %v2271_v34 }
 0xed0   :  { %2430 = vmatpush3.msra.mxu0 %v2255_v35 }
 0xed1   :  { %v1468_v21 = vadd.f32 1e-05, %v1464_v18  ;;  %2431 = vmatprep.subr.mxu0 %v2270_v36 }
 0xed2   :  { %2432 = vmatpush3.msra.mxu0 %v2254_v37 }
 0xed3   :  { %2658 = vrsqrt.f32 %v1468_v21  ;;  %2433 = vmatprep.subr.mxu0 %v2269_v38  ;;  %v1774_v38 = vld [vmem:[%s3669_s19] sm:$0x1] }
 0xed4   :  { %2434 = vmatpush3.msra.mxu0 %v2253_v39 }
 0xedc   :  { %v2657_v23 = vpop.eup %2656 }
 0xedd   :  { %v1471_v26 = vmul.f32 %v2657_v23, %v1465_v22 }
 0xedf   :  { %v1479_v28 = vmul.f32 %v2232_v25, %v1471_v26 }
 0xee0   :  { %v2659_v29 = vpop.eup %2658 }
 0xee1   :  { %v1487_v30 = vadd.f32 %v2233_v24, %v1479_v28  ;;  %v1472_v31 = vmul.f32 %v2659_v29, %v1466_v27 }
 0xee3   :  { %2251 = vmatmul.mubr.msk.f32.vlgmr.msra.gmra.mxu1 %vm331_vm1, %v1487_v30  ;;  %v1480_v32 = vmul.f32 %v2232_v25, %v1472_v31 }
 0xee4   :  { %1595 = vmatprep.mubr.f32.mxu1 %v2690_v51 }
 0xee5   :  { %v1488_v20 = vadd.f32 %v2233_v24, %v1480_v32  ;;  %v2290_v32 = vld [vmem:[%s3668_s18 + $0x1] ss:$0 sm:$0xff] }
 0xee7   :  { %2252 = vmatmul.mubr.msk.f32.gmra.mxu1 %vm331_vm1, %v1488_v20 }
 0xee8   :  { %2585 = vmatprep.mubr.msk.f32.mxu1 %vm2692_vm3, %v2690_v51 }
 0xfa3   :  { %v1591_v43 = vpop.f32.mrf.mxu1 }
 0xfa4   :  { %v1592_v44 = vadd.f32 %v1591_v43, %v1512_v41 }
 0xfa5   :  { %v1593_v45 = vpop.f32.mrf.mxu1 }
 0xfa6   :  { %v1594_v46 = vadd.f32 %v1593_v45, %v1516_v42  ;;  %v1602_v49 = vmax.f32 %v1592_v44, 0.0  ;;  %v97_v44 = vld [vmem:[%s3714_s26] sm:$0x3] }
 0xfa7   :  { %v1597_v47 = vpop.f32.mrf.mxu1 }
 0xfa8   :  { %v1603_v48 = vmax.f32 %v1594_v46, 0.0  ;;  %v1598_v52 = vadd.f32 %v1597_v47, %v1512_v41 }
 0xfa9   :  { %v1599_v54 = vpop.f32.mrf.mxu1 }
 0xfaa   :  { %v1600_v59 = vadd.f32 %v1599_v54, %v1516_v42  ;;  %1711 = vmatprep.mubr.f32.mxu0 %v1603_v48  ;;  %v1604_v56 = vmax.f32 %v1598_v52, 0.0 }
 0xfab   :  { %1712 = vmatmul.mubr.f32.vlgmr.msra.gmra.mxu0 %v1602_v49 }
 0xfac   :  { %v1605_v60 = vmax.f32 %v1600_v59, 0.0 }
 0xfae   :  { %1716 = vmatprep.mubr.f32.mxu0 %v1605_v60 }
 0xfaf   :  { %1717 = vmatmul.mubr.f32.gmra.mxu0 %v1604_v56 }
0x106b   :  { %v2435_v58 = vpop.f32.mrf.mxu0 }
0x106d   :  { %v2436_v14 = vpop.f32.mrf.mxu0 }
0x106e   :  { %v2437_v55 = vadd.f32 %v2436_v14, %v2435_v58  ;;  %v1961_v14 = vld [vmem:[%s3671_s21 + $0x38] sm:$0xff] }
0x106f   :  { %v2438_v13 = vpop.f32.mrf.mxu0 }
0x1070   :  { %v1714_v62 = vadd.f32 %v2437_v55, %v2286_v5  ;;  %v1959_v55 = vld [vmem:[%s3671_s21 + $0x28] sm:$0xff] }
0x1071   :  { %v2439_v57 = vpop.f32.mrf.mxu0 }
0x1072   :  { %v2440_v63 = vadd.f32 %v2439_v57, %v2438_v13  ;;  %v1722_v1 = vadd.f32 %v1714_v62, %v1487_v30  ;;  %v2289_v30 = vld [vmem:[%s3667_s17 + $0x1] ss:$0 sm:$0xff]  ;;  %v1957_v13 = vld [vmem:[%s3671_s21 + $0x18] sm:$0xff]  ;;  %v1956_v57 = vld [vmem:[%s3671_s21 + $0x10] sm:$0xff] }
0x1073   :  { %v1955_v62 = vld [vmem:[%s3671_s21 + $0x8] sm:$0xff] }
0x1074   :  { %v1719_v0 = vadd.f32 %v2440_v63, %v2286_v5  ;;  %v1736_v6 = vmul.f32 %v1722_v1, %v1722_v1  ;;  %v1728_v50 = vsel %vm331_vm1, %v1722_v1, 0.0  ;;  %v1958_v5 = vld [vmem:[%s3671_s21 + $0x20] sm:$0xff] }
0x1075   :  { %v1954_v63 = vld [vmem:[%s3671_s21] sm:$0xff] }
0x1076   :  { %v1723_v2 = vadd.f32 %v1719_v0, %v1488_v20  ;;  %v1738_v7 = vsel %vm331_vm1, %v1736_v6, 0.0  ;;  %v2047_v0 = vld [vmem:[%s3673_s23 + $0x18] sm:$0xff]  ;;  %v2295_v6 = vld [vmem:[%s3672_s22] ss:$0 sm:$0xff]  ;;  %s2694_s22 = smov [#allocation4]  }
0x1077   :  { %s2159_s8 = sshll.u32 %s2694_s22, 4  ;;  %s2160_s8 = int_to_ptr.vmem [resolvable:$true] %s2159_s8 }
0x1078   :  { %v1731_v3 = vsel %vm331_vm1, %v1723_v2, 0.0  ;;  %v1737_v4 = vmul.f32 %v1723_v2, %v1723_v2  ;;  %s2668_s30 = scalar_lea.vmem %s2160_s8, 32  ;;  %p2673_p1 = scmp.lt.s32.totalorder %s2160_s8, %s2160_s8 }
0x1079   :  { %1732 = vadd.xlane.f32.xlu1 %v1731_v3  ;;  %p2669_p0 = scmp.ne.s32.totalorder %s2160_s8, %s2668_s30  ;;  %p2674_p2 = scmp.lt.s32.totalorder %s2668_s30, %s2668_s30 }
0x107a   :  { %v1741_v53 = vsel %vm331_vm1, %v1737_v4, 0.0  ;;  %v2045_v4 = vld [vmem:[%s3673_s23 + $0x8] sm:$0xff] }
0x107b   :  { %1742 = vadd.xlane.f32.xlu0 %v1741_v53  ;;  %v2044_v53 = vld [vmem:[%s3673_s23] sm:$0xff]  ;;  %p2675_p3 = por %p2674_p2, %p2673_p1 }
0x107d   :  { %1729 = vadd.xlane.f32.xlu1 %v1728_v50  ;;  %p2676_p4 = pnand %p2675_p3, %p2669_p0 }
0x107f   :  { %1739 = vadd.xlane.f32.xlu0 %v1738_v7 }
0x108e   :  { %1778 = vperm.xlu1 %2630, %v1775_v8  }
0x1102   :  { %v1733_v10 = vpop.xlane.xlu1 %1732 }
0x1103   :  { %v1735_v11 = vmul.f32 0.015625, %v1733_v10 }
0x1104   :  { %v1743_v12 = vpop.xlane.xlu0 %1742 }
0x1105   :  { %v1747_v15 = vmul.f32 %v1735_v11, %v1735_v11  ;;  %v1745_v16 = vmul.f32 0.015625, %v1743_v12  ;;  %v1751_v28 = vsub.f32 %v1723_v2, %v1735_v11  ;;  %v2046_v2 = vld [vmem:[%s3673_s23 + $0x10] sm:$0xff]  ;;  %v2299_v12 = vld [vmem:[%s3675_s25] ss:$0 sm:$0xff] }
0x1106   :  { %v1730_v17 = vpop.xlane.xlu1 %1729 }
0x1107   :  { %v1749_v18 = vsub.f32 %v1745_v16, %v1747_v15  ;;  %v1734_v21 = vmul.f32 0.015625, %v1730_v17 }
0x1108   :  { %v1740_v22 = vpop.xlane.xlu0 %1739 }
0x1109   :  { %v1753_v23 = vadd.f32 1e-05, %v1749_v18  ;;  %v1746_v25 = vmul.f32 %v1734_v21, %v1734_v21  ;;  %v1744_v26 = vmul.f32 0.015625, %v1740_v22  ;;  %v1750_v20 = vsub.f32 %v1722_v1, %v1734_v21 }
0x110a   :  { %v1779_v39 = vpop.permute.xlu1 %1778 }
0x110b   :  { %2660 = vrsqrt.f32 %v1753_v23  ;;  %v1748_v24 = vsub.f32 %v1744_v26, %v1746_v25  ;;  %v1784_v40 = vrot.slane %v1779_v39, %v2997_v61 }
0x110d   :  { %v1752_v27 = vadd.f32 1e-05, %v1748_v24 }
0x110f   :  { %2662 = vrsqrt.f32 %v1752_v27 }
0x1118   :  { %v2661_v29 = vpop.eup %2660 }
0x1119   :  { %v1757_v31 = vmul.f32 %v2661_v29, %v1751_v28 }
0x111b   :  { %v1765_v33 = vmul.f32 %v2289_v30, %v1757_v31 }
0x111c   :  { %v2663_v19 = vpop.eup %2662 }
0x111d   :  { %v1773_v34 = vadd.f32 %v2290_v32, %v1765_v33  ;;  %v1756_v35 = vmul.f32 %v2663_v19, %v1750_v20 }
0x111f   :  { %2582 = vmatpush3.xpose.msk.msra.mxu1 %vm331_vm1, %v1773_v34  ;;  %v1764_v36 = vmul.f32 %v2289_v30, %v1756_v35 }
0x1120   :  { %2583 = vmatprep.subr.mxu1 %v2690_v51 }
0x1121   :  { %v1772_v37 = vadd.f32 %v2290_v32, %v1764_v36 }
0x1123   :  { %2584 = vmatpush3.xpose.msk.msra.mxu1 %vm331_vm1, %v1772_v37 }
0x1124   :  { %2588 = vmatprep.subr.mxu1 %v2690_v51 }
0x1126   :  { %2586 = vmatmul.mubr.msk.f32.vlgmr.msra.gmra.mxu1 %vm331_vm1, %v1774_v38 }
0x1127   :  { %2589 = vmatpush3.msra.mxu1 %v1773_v34  ;;  %2592 = vmatprep.mubr.msk.f32.mxu1 %vm2692_vm3, %v2690_v51 }
0x1128   :  { %2590 = vmatprep.subr.mxu1 %v2690_v51 }
0x1129   :  { %2591 = vmatpush3.msra.mxu1 %v1772_v37 }
0x112a   :  { %2595 = vmatprep.subr.mxu1 %v2690_v51 }
0x11e6   :  { %v1860_v41 = vpop.f32.mrf.mxu1 }
0x11e7   :  { %v1861_v42 = vadd.f32 %v1860_v41, %v1784_v40 }
0x11e8   :  { %v2587_v43 = vpop.f32.mrf.mxu1 }
0x11e9   :  { %v1867_v45 = vrot.slane %v1861_v42, %v2997_v61  ;;  %v1960_v61 = vld [vmem:[%s3671_s21 + $0x30] sm:$0xff] }
0x11eb   :  { %v1868_v46 = vadd.f32 %v1867_v45, %v97_v44 }
0x11ed   :  { %v1870_v47 = vsel %vm1869_vm4, %v1868_v46, -inf }
0x11ee   :  { %1871 = vmax.xlane.f32.xlu0 %v1870_v47 }
0x1277   :  { %v1872_v48 = vpop.xlane.xlu0 %1871 }
0x1278   :  { %v1873_v49 = vsub.f32 %v1868_v46, %v1872_v48 }
0x127a   :  { %v1874_v52 = vmul.f32 1.442695, %v1873_v49 }
0x127c   :  { %2664 = vpow2.f32 %v1874_v52 }
0x1289   :  { %v2665_v54 = vpop.eup %2664 }
0x128a   :  { %v1876_v59 = vsel %vm1869_vm4, %v2665_v54, 0.0 }
0x128b   :  { %1877 = vadd.xlane.f32.xlu0 %v1876_v59 }
0x1314   :  { %v1878_v60 = vpop.xlane.xlu0 %1877 }
0x1315   :  { %2666 = vrcp.f32 %v1878_v60 }
0x1322   :  { %v2667_v56 = vpop.eup %2666 }
0x1323   :  { %v1880_v58 = vmul.f32 %v2667_v56, %v2665_v54 }
0x1325   :  { %2593 = vmatmul.mubr.msk.f32.vlgmr.msra.gmra.mxu1 %vm504_vm2, %v1880_v58 }
0x1326   :  { %2596 = vmatpush3.msra.mxu1 %v1961_v14  ;;  %2611 = vmatprep.mubr.msk.f32.mxu1 %vm2692_vm3, %v2690_v51 }
0x1327   :  { %2597 = vmatprep.subr.mxu1 %v2690_v51 }
0x1328   :  { %2598 = vmatpush3.msra.mxu1 %v1960_v61 }
0x1329   :  { %2599 = vmatprep.subr.mxu1 %v2690_v51 }
0x132a   :  { %2600 = vmatpush3.msra.mxu1 %v1959_v55 }
0x132b   :  { %2601 = vmatprep.subr.mxu1 %v2690_v51 }
0x132c   :  { %2602 = vmatpush3.msra.mxu1 %v1958_v5 }
0x132d   :  { %2603 = vmatprep.subr.mxu1 %v2690_v51 }
0x132e   :  { %2604 = vmatpush3.msra.mxu1 %v1957_v13 }
0x132f   :  { %2605 = vmatprep.subr.mxu1 %v2690_v51 }
0x1330   :  { %2606 = vmatpush3.msra.mxu1 %v1956_v57 }
0x1331   :  { %2607 = vmatprep.subr.mxu1 %v2690_v51 }
0x1332   :  { %2608 = vmatpush3.msra.mxu1 %v1955_v62 }
0x1333   :  { %2609 = vmatprep.subr.mxu1 %v2690_v51 }
0x1334   :  { %2610 = vmatpush3.msra.mxu1 %v1954_v63 }
0x1335   :  { %2614 = vmatprep.subr.mxu1 %v2690_v51 }
0x13e5   :  { %v1950_v1 = vpop.f32.mrf.mxu1 }
0x13e6   :  { %2612 = vmatmul.mubr.msk.f32.vlgmr.msra.gmra.mxu1 %vm331_vm1, %v1950_v1 }
0x13e7   :  { %v2594_v3 = vpop.f32.mrf.mxu1  ;;  %2615 = vmatpush3.msra.mxu1 %v2047_v0  ;;  %2622 = vmatprep.mubr.msk.f32.mxu1 %vm2692_vm3, %v2690_v51 }
0x13e8   :  { %2616 = vmatprep.subr.mxu1 %v2690_v51 }
0x13e9   :  { %2617 = vmatpush3.msra.mxu1 %v2046_v2 }
0x13ea   :  { %2618 = vmatprep.subr.mxu1 %v2690_v51 }
0x13eb   :  { %2619 = vmatpush3.msra.mxu1 %v2045_v4 }
0x13ec   :  { %2620 = vmatprep.subr.mxu1 %v2690_v51  ;;  %v2297_v51 = vld [vmem:[%s3674_s24] ss:$0 sm:$0xff] }
0x13ed   :  { %2621 = vmatpush3.msra.mxu1 %v2044_v53 }
0x14a6   :  { %v2038_v50 = vpop.f32.mrf.mxu1 }
0x14a7   :  { %v2039_v7 = vadd.f32 %v2295_v6, %v2038_v50 }
0x14a8   :  { %v2613_v8 = vpop.f32.mrf.mxu1 }
0x14a9   :  { %2623 = vmatmul.mubr.msk.f32.vlgmr.msra.gmra.mxu1 %vm2055_vm5, %v2039_v7  ;;  %2043 = vst.msk [vmem:[#allocation4] sm:$0x3] %vm2042_vm6, %v2039_v7 }
0x1569   :  { %v2125_v9 = vpop.f32.mrf.mxu1 }
0x156a   :  { %v2126_v10 = vadd.f32 %v2297_v51, %v2125_v9 }
0x156b   :  { %v2624_v11 = vpop.f32.mrf.mxu1 }
0x156c   :  { %v2129_v15 = vmax.f32 %v2126_v10, 0.0 }
0x156e   :  { %v2137_v16 = vmul.f32 %v2299_v12, %v2129_v15 }
0x1570   :  { %v2138_v17 = vsel %vm2042_vm6, %v2137_v16, 0.0 }
0x1571   :  { %2139 = vadd.xlane.f32.xlu0 %v2138_v17 }
0x1572   :  { %2679 = shalt.err (!%p2676_p4)
}
0x1573   :  { %2162 = dma.vmem_to_hbm [thread:$0]  %s2160_s8, 32, %s3677_s28, [#allocation5]   ;;  %v2300_v18 = vld [vmem:[#allocation3] ss:$0 sm:$0xff]  ;;  %vm2149_vm7 = vcmask 1024  }
0x15fa   :  { %v2140_v21 = vpop.xlane.xlu0 %2139 }
0x15fb   :  { %v2148_v22 = vadd.f32 %v2300_v18, %v2140_v21 }
0x15fd   :  { %2150 = vst.msk [vmem:[%s3676_s27] sm:$0x3] %vm2149_vm7, %v2148_v22 }
0x15fe   :  { %2688 = dma.done.wait [#allocation5], 32  }
0x15ff   :  { %2689 = vsyncadd [#allocation5], 4294967264 }
0x1600   :  { %2168 = vsyncpa [#allocation5], 1 }

</bundles_post_ra>
